<compile_context>
chip_gen: v5e
topology: v5e:2x2
jax: 0.10.0
libtpu: 0.0.40
codegen_flags: <defaults>
</compile_context>

<pallas_src>
import jax
import jax.numpy as jnp
from jax import lax
from jax.experimental import pallas as pl
from jax.experimental.pallas import tpu as pltpu

K_FEATURES = 18432
N_CLASSES = 10
# Batch tile: 2 * 64 * 18432 * 4 B = 9.4 MiB for the double-buffered x stream
# plus ~1.5 MiB of weight -> fits the 16/32/32 MiB default scoped VMEM on
# v5e/v6e/v7x, while each step still moves a 4.7 MB DMA (near HBM roofline).
TB_MAX = 64


def _linear_logsoftmax_kernel(x_ref, wt_ref, b_ref, o_ref):
    """o = log_softmax(x @ W^T + b) for one batch tile.

    x_ref : (TB, K) f32  activations, K lane-dense
    wt_ref: (N, K)  f32  weight in PyTorch (out, in) layout, K lane-dense
    b_ref : (1, N)  f32  bias
    o_ref : (TB, N) f32  log-probabilities
    """
    # NT matmul: contract both operands over their lane-dense last dim (K).
    z = lax.dot_general(
        x_ref[...],
        wt_ref[...],
        dimension_numbers=(((1,), (1,)), ((), ())),
        preferred_element_type=jnp.float32,
    ) + b_ref[...]                                       # (TB, N) logits

    # Numerically stable log-softmax over the class axis.
    m = jnp.max(z, axis=1, keepdims=True)
    lse = jnp.log(jnp.sum(jnp.exp(z - m), axis=1, keepdims=True)) + m
    o_ref[...] = (z - lse).astype(o_ref.dtype)


@jax.jit
def derived_model7_forward(x, w, b):
    """x: (B, 18432) f32, w: (10, 18432) f32 (PyTorch layout), b: (10,) f32.

    Returns (B, 10) f32 log-probabilities.
    """
    B, K = x.shape
    N, Kw = w.shape
    assert K == Kw, f"feature mismatch: {K} vs {Kw}"
    b2 = b.reshape(1, N).astype(jnp.float32)

    # Batch tile: full batch when small (single step, minimal overhead),
    # otherwise TB_MAX rows per step (divisible by 8, partial last block is
    # masked by Pallas).
    TB = B if B <= TB_MAX else TB_MAX
    grid = (pl.cdiv(B, TB),)

    cost = pl.CostEstimate(
        flops=2 * B * K * N,
        transcendentals=B * N,
        bytes_accessed=4 * (B * K + N * K + N + B * N),
    )

    return pl.pallas_call(
        _linear_logsoftmax_kernel,
        out_shape=jax.ShapeDtypeStruct((B, N), jnp.float32),
        grid=grid,
        in_specs=[
            pl.BlockSpec((TB, K), lambda i: (i, 0)),   # batch-tiled activations
            pl.BlockSpec((N, K), lambda i: (0, 0)),    # weight: fetched once, VMEM-resident
            pl.BlockSpec((1, N), lambda i: (0, 0)),    # bias: fetched once
        ],
        out_specs=pl.BlockSpec((TB, N), lambda i: (i, 0)),
        compiler_params=pltpu.CompilerParams(
            dimension_semantics=("parallel",),          # megacore split on v7x
        ),
        cost_estimate=cost,
    )(x, w, b2)


def _reference(x, w, b):
    z = x @ w.T + b[None, :]
    return jax.nn.log_softmax(z, axis=1)


if __name__ == "__main__":
    key = jax.random.PRNGKey(0)
    kx, kw, kb = jax.random.split(key, 3)

    # PyTorch-style init: weight (out, in) uniform(-1/sqrt(K), 1/sqrt(K)).
    bound = 1.0 / (K_FEATURES ** 0.5)
    w = jax.random.uniform(kw, (N_CLASSES, K_FEATURES), dtype=jnp.float32,
                           minval=-bound, maxval=bound)
    b = jax.random.uniform(kb, (N_CLASSES,), dtype=jnp.float32,
                           minval=-bound, maxval=bound)

    # Small-batch path (single grid step, matches the module's typical use).
    x_small = jax.random.normal(kx, (2, K_FEATURES), dtype=jnp.float32)
    out_small = jax.block_until_ready(derived_model7_forward(x_small, w, b))
    ref_small = _reference(x_small, w, b)
    assert out_small.shape == (2, N_CLASSES)
    assert jnp.allclose(out_small, ref_small, atol=1e-4, rtol=1e-4), (
        f"small-batch max abs err {jnp.max(jnp.abs(out_small - ref_small))}"
    )

    # Larger batch exercises the B-tiled, pipelined path (grid > 1 step).
    x_big = jax.random.normal(kx, (128, K_FEATURES), dtype=jnp.float32)
    out_big = jax.block_until_ready(derived_model7_forward(x_big, w, b))
    ref_big = _reference(x_big, w, b)
    assert out_big.shape == (128, N_CLASSES)
    assert jnp.allclose(out_big, ref_big, atol=1e-4, rtol=1e-4), (
        f"tiled-batch max abs err {jnp.max(jnp.abs(out_big - ref_big))}"
    )

    print("KERNEL_OK")
</pallas_src>

<mosaic_0001>
module attributes {stable_mosaic.version = 11 : i64} {
  func.func @_linear_logsoftmax_kernel(%arg0: i32, %arg1: memref<2x18432xf32, #tpu.memory_space<vmem>>, %arg2: memref<10x18432xf32, #tpu.memory_space<vmem>>, %arg3: memref<1x10xf32, #tpu.memory_space<vmem>>, %arg4: memref<2x10xf32, #tpu.memory_space<vmem>>) attributes {dimension_semantics = [#tpu.dimension_semantics<parallel>], iteration_bounds = array<i64: 1>, scalar_prefetch = 0 : i64, scratch_operands = 0 : i64, tpu.core_type = #tpu.core_type<tc>, window_params = [{transform_indices = @transform_0, window_bounds = array<i64: 2, 18432>}, {pipeline_mode = #tpu.pipeline_mode<synchronous>, transform_indices = @transform_1, window_bounds = array<i64: 10, 18432>}, {pipeline_mode = #tpu.pipeline_mode<synchronous>, transform_indices = @transform_2, window_bounds = array<i64: 1, 10>}, {transform_indices = @transform_3, window_bounds = array<i64: 2, 10>}]} {
    %c0 = arith.constant 0 : index
    %c0_0 = arith.constant 0 : index
    %0 = vector.load %arg1[%c0, %c0_0] : memref<2x18432xf32, #tpu.memory_space<vmem>>, vector<2x18432xf32>
    %c0_1 = arith.constant 0 : index
    %c0_2 = arith.constant 0 : index
    %1 = vector.load %arg2[%c0_1, %c0_2] : memref<10x18432xf32, #tpu.memory_space<vmem>>, vector<10x18432xf32>
    %cst = arith.constant dense<0.000000e+00> : vector<2x10xf32>
    %2 = tpu.matmul %0, %1, %cst {dimension_numbers = #tpu.dot_dimension_numbers<[1], [1], [0], [0], [0, 0, 1, 0], [], []>} : vector<2x18432xf32>, vector<10x18432xf32>, vector<2x10xf32> -> vector<2x10xf32>
    %c0_3 = arith.constant 0 : index
    %c0_4 = arith.constant 0 : index
    %3 = vector.load %arg3[%c0_3, %c0_4] : memref<1x10xf32, #tpu.memory_space<vmem>>, vector<1x10xf32>
    %4 = vector.broadcast %3 : vector<1x10xf32> to vector<2x10xf32>
    %5 = arith.addf %2, %4 : vector<2x10xf32>
    %cst_5 = arith.constant dense<0xFF800000> : vector<2xf32>
    %6 = vector.multi_reduction <maximumf>, %5, %cst_5 [1] : vector<2x10xf32> to vector<2xf32>
    %7 = vector.shape_cast %6 : vector<2xf32> to vector<2x1xf32>
    %8 = vector.broadcast %7 : vector<2x1xf32> to vector<2x10xf32>
    %9 = arith.subf %5, %8 : vector<2x10xf32>
    %10 = math.exp %9 : vector<2x10xf32>
    %cst_6 = arith.constant dense<0.000000e+00> : vector<2xf32>
    %11 = vector.multi_reduction <add>, %10, %cst_6 [1] : vector<2x10xf32> to vector<2xf32>
    %12 = vector.shape_cast %11 : vector<2xf32> to vector<2x1xf32>
    %13 = math.log %12 : vector<2x1xf32>
    %14 = arith.addf %13, %7 : vector<2x1xf32>
    %15 = vector.broadcast %14 : vector<2x1xf32> to vector<2x10xf32>
    %16 = arith.subf %5, %15 : vector<2x10xf32>
    %c0_7 = arith.constant 0 : index
    %c0_8 = arith.constant 0 : index
    %17 = vector.load %arg4[%c0_7, %c0_8] : memref<2x10xf32, #tpu.memory_space<vmem>>, vector<2x10xf32>
    tpu.vector_store %arg4[%c0_7, %c0_8], %16 {strides = array<i32>} : memref<2x10xf32, #tpu.memory_space<vmem>>, vector<2x10xf32>,
    return
  }
  func.func @transform_0(%arg0: i32) -> (i32, i32) {
    %c0_i32 = arith.constant 0 : i32
    %c0_i32_0 = arith.constant 0 : i32
    return %arg0, %c0_i32 : i32, i32
  }
  func.func @transform_1(%arg0: i32) -> (i32, i32) {
    %c0_i32 = arith.constant 0 : i32
    %c0_i32_0 = arith.constant 0 : i32
    %c0_i32_1 = arith.constant 0 : i32
    return %c0_i32, %c0_i32_0 : i32, i32
  }
  func.func @transform_2(%arg0: i32) -> (i32, i32) {
    %c0_i32 = arith.constant 0 : i32
    %c0_i32_0 = arith.constant 0 : i32
    %c0_i32_1 = arith.constant 0 : i32
    return %c0_i32, %c0_i32_0 : i32, i32
  }
  func.func @transform_3(%arg0: i32) -> (i32, i32) {
    %c0_i32 = arith.constant 0 : i32
    %c0_i32_0 = arith.constant 0 : i32
    return %arg0, %c0_i32 : i32, i32
  }
}

</mosaic_0001>

<bundles_post_ra>
// kernel: derived_model7_forward.1
= control target key start
LH: loop header
LB: loop body
LE: loop exit
PB: predicated region body
PF: predicated region fallthrough
CT: control target
= control target key end

     0   :  { %8 = vsyncpa [#allocation3], 0  ;;  %s4138_s0 = inlined_call_operand.hbm [shape: f32[2,18432], index: 0, kind: input, shape index: {}]   ;;  %s4139_s1 = inlined_call_operand.hbm [shape: f32[10,18432], index: 1, kind: input, shape index: {}]   ;;  %s4140_s2 = inlined_call_operand.hbm [shape: f32[1,10], index: 2, kind: input, shape index: {}]   ;;  %s4141_s3 = inlined_call_operand.hbm [shape: f32[2,10], index: 3, kind: output, shape index: {}]  }
   0x1   :  { %9 = vsyncpa [#allocation6], 0  ;;  %s26_s14 = sshll.u32 %s4139_s1, 4  ;;  %s27_s14 = int_to_ptr.hbm [resolvable:$true] %s26_s14 }
   0x2   :  { %10 = vsyncpa [#allocation4], 0  ;;  %s3773_s15 = smov [#allocation5]   ;;  %s16_s19 = sshll.u32 %s4138_s0, 4  ;;  %s17_s19 = int_to_ptr.hbm [resolvable:$true] %s16_s19 }
   0x3   :  { %s28_s16 = sshll.u32 %s3773_s15, 4  ;;  %s3774_s20 = smov 18432   ;;  %s29_s16 = int_to_ptr.vmem [resolvable:$true] %s28_s16 }
   0x4   :  { %s3775_s21 = smov 1152   ;;  %s3776_s22 = smov [#allocation2]  }
   0x5   :  { %34 = dma.hbm_to_vmem [thread:$0]  %s27_s14, 36864, %s29_s16, [#allocation6], %s3774_s20, %s3774_s20, %s3775_s21  }
   0x6   :  { %s18_s23 = sshll.u32 %s3776_s22, 4  ;;  %s40_s26 = sshll.u32 %s4140_s2, 4  ;;  %s19_s23 = int_to_ptr.vmem [resolvable:$true] %s18_s23  ;;  %s41_s26 = int_to_ptr.hbm [resolvable:$true] %s40_s26 }
   0x7   :  { %21 = dma.hbm_to_vmem [thread:$0]  %s17_s19, 4608, %s19_s23, [#allocation3]  }
   0x8   :  { %s3777_s1 = smov [#allocation7]  }
   0x9   :  { %s42_s27 = sshll.u32 %s3777_s1, 4  ;;  %s43_s27 = int_to_ptr.vmem [resolvable:$true] %s42_s27 }
   0xa   :  { %45 = dma.hbm_to_vmem [thread:$0]  %s41_s26, 16, %s43_s27, [#allocation6]  }
   0xb   :  { %3767 = dma.done.wait [#allocation3], 4608  }
   0xc   :  { %3768 = vsyncadd [#allocation3], 4294962688 }
   0xd   :  { %3769 = dma.done.wait [#allocation6], 36880  }
   0xe   :  { %3770 = vsyncadd [#allocation6], 4294930416  ;;  %v240_v0 = vld [vmem:[#allocation5 + $0x490] sm:$0x3]  ;;  %v238_v1 = vld [vmem:[#allocation5 + $0x480] sm:$0x3] }
   0xf   :  { %v241_v2 = vld [vmem:[#allocation5 + $0x498] sm:$0x3]  ;;  %801 = vmatpush.xpose.msra.mxu2 %v240_v0  ;;  %761 = vmatpush.xpose.msra.mxu0 %v238_v1  ;;  %v239_v3 = vld [vmem:[#allocation5 + $0x488] sm:$0x3]  ;;  %v96_v4 = vld [vmem:[#allocation5 + $0x10] sm:$0xff]  ;;  %vm3627_vm0 = vcmask 74752  }
  0x10   :  { %821 = vmatpush.xpose.msra.mxu3 %v241_v2  ;;  %781 = vmatpush.xpose.msra.mxu1 %v239_v3  ;;  %v94_v5 = vld [vmem:[#allocation5] sm:$0xff]  ;;  %v97_v7 = vld [vmem:[#allocation5 + $0x18] sm:$0xff]  ;;  %v244_v8 = vld [vmem:[#allocation5 + $0x4b0] sm:$0x3]  ;;  %s3778_s0 = smov [#allocation8]   ;;  %s3649_s30 = sshll.u32 %s4141_s3, 4  ;;  %s3650_s30 = int_to_ptr.hbm [resolvable:$true] %s3649_s30 }
  0x11   :  { %v58_v6 = vld [vmem:[#allocation2] sm:$0xff]  ;;  %v95_v9 = vld [vmem:[#allocation5 + $0x8] sm:$0xff]  ;;  %v245_v11 = vld [vmem:[#allocation5 + $0x4b8] sm:$0x3]  ;;  %s3647_s2 = sshll.u32 %s3778_s0, 4  ;;  %s3648_s2 = int_to_ptr.vmem [resolvable:$true] %s3647_s2 }
  0x12   :  { %422 = vst [vmem:[#allocation1] ss:$4 sm:$0xff] %v58_v6  ;;  %v242_v10 = vld [vmem:[#allocation5 + $0x4a0] sm:$0x3]  ;;  %v243_v12 = vld [vmem:[#allocation5 + $0x4a8] sm:$0x3] }
  0x13   :  { %802 = vmatpush.xpose.msra.mxu2 %v96_v4  ;;  %762 = vmatpush.xpose.msra.mxu0 %v94_v5  ;;  %v59_v13 = vld [vmem:[#allocation2 + $0x8] sm:$0xff]  ;;  %v100_v14 = vld [vmem:[#allocation5 + $0x30] sm:$0xff]  ;;  %v98_v15 = vld [vmem:[#allocation5 + $0x20] sm:$0xff] }
  0x14   :  { %822 = vmatpush.xpose.msra.mxu3 %v97_v7  ;;  %424 = vst [vmem:[#allocation1 + $0x20] ss:$4 sm:$0xff] %v59_v13  ;;  %782 = vmatpush.xpose.msra.mxu1 %v95_v9  ;;  %v101_v16 = vld [vmem:[#allocation5 + $0x38] sm:$0xff]  ;;  %v99_v17 = vld [vmem:[#allocation5 + $0x28] sm:$0xff]  ;;  %v248_v18 = vld [vmem:[#allocation5 + $0x4d0] sm:$0x3] }
  0x15   :  { %v60_v19 = vld [vmem:[#allocation2 + $0x10] sm:$0xff]  ;;  %v246_v24 = vld [vmem:[#allocation5 + $0x4c0] sm:$0x3]  ;;  %v249_v25 = vld [vmem:[#allocation5 + $0x4d8] sm:$0x3] }
  0x16   :  { %v247_v26 = vld [vmem:[#allocation5 + $0x4c8] sm:$0x3]  ;;  %v104_v28 = vld [vmem:[#allocation5 + $0x50] sm:$0xff]  ;;  %v61_v32 = vld [vmem:[#allocation2 + $0x18] sm:$0xff] }
  0x17   :  { %881 = vmatpush.xpose.msrb.mxu2 %v244_v8  ;;  %841 = vmatpush.xpose.msrb.mxu0 %v242_v10  ;;  %v102_v33 = vld [vmem:[#allocation5 + $0x40] sm:$0xff]  ;;  %v105_v34 = vld [vmem:[#allocation5 + $0x58] sm:$0xff]  ;;  %v252_v35 = vld [vmem:[#allocation5 + $0x4f0] sm:$0x3] }
  0x18   :  { %901 = vmatpush.xpose.msrb.mxu3 %v245_v11  ;;  %861 = vmatpush.xpose.msrb.mxu1 %v243_v12  ;;  %v250_v36 = vld [vmem:[#allocation5 + $0x4e0] sm:$0x3]  ;;  %v103_v37 = vld [vmem:[#allocation5 + $0x48] sm:$0xff]  ;;  %v253_v39 = vld [vmem:[#allocation5 + $0x4f8] sm:$0x3] }
  0x19   :  { %v427_v20 = vld.sshfl [vmem:[#allocation1 + $0x10] sm:$0xff pattern:$0x73625140]  ;;  %v425_v21 = vld.sshfl [vmem:[#allocation1] sm:$0xff pattern:$0x73625140] }
  0x1a   :  { %803 = vmatmul.f32.vlgmr.msra.gmra.mxu2 %v427_v20  ;;  %763 = vmatmul.f32.vlgmr.msra.gmra.mxu0 %v425_v21  ;;  %v428_v22 = vld.sshfl [vmem:[#allocation1 + $0x18] sm:$0xff pattern:$0x73625140]  ;;  %v426_v23 = vld.sshfl [vmem:[#allocation1 + $0x8] sm:$0xff pattern:$0x73625140] }
  0x1b   :  { %882 = vmatpush.xpose.msrb.mxu2 %v100_v14  ;;  %823 = vmatmul.f32.vlgmr.msra.gmra.mxu3 %v428_v22  ;;  %433 = vst [vmem:[#allocation1] ss:$4 sm:$0xff] %v60_v19  ;;  %v431_v27 = vld.sshfl [vmem:[#allocation1 + $0x30] sm:$0xff pattern:$0x73625140]  ;;  %v62_v44 = vld [vmem:[#allocation2 + $0x20] sm:$0xff] }
  0x1c   :  { %783 = vmatmul.f32.vlgmr.msra.gmra.mxu1 %v426_v23  ;;  %842 = vmatpush.xpose.msrb.mxu0 %v98_v15  ;;  %v429_v29 = vld.sshfl [vmem:[#allocation1 + $0x20] sm:$0xff pattern:$0x73625140]  ;;  %v432_v30 = vld.sshfl [vmem:[#allocation1 + $0x38] sm:$0xff pattern:$0x73625140] }
  0x1d   :  { %902 = vmatpush.xpose.msrb.mxu3 %v101_v16  ;;  %862 = vmatpush.xpose.msrb.mxu1 %v99_v17  ;;  %v430_v31 = vld.sshfl [vmem:[#allocation1 + $0x28] sm:$0xff pattern:$0x73625140]  ;;  %v251_v43 = vld [vmem:[#allocation5 + $0x4e8] sm:$0x3]  ;;  %v108_v45 = vld [vmem:[#allocation5 + $0x70] sm:$0xff] }
  0x1e   :  { %434 = vst [vmem:[#allocation1 + $0x20] ss:$4 sm:$0xff] %v61_v32  ;;  %v106_v46 = vld [vmem:[#allocation5 + $0x60] sm:$0xff]  ;;  %v109_v47 = vld [vmem:[#allocation5 + $0x78] sm:$0xff]  ;;  %v107_v48 = vld [vmem:[#allocation5 + $0x68] sm:$0xff] }
  0x1f   :  { %961 = vmatpush.xpose.msra.mxu2 %v248_v18  ;;  %v256_v52 = vld [vmem:[#allocation5 + $0x510] sm:$0x3]  ;;  %v63_v54 = vld [vmem:[#allocation2 + $0x28] sm:$0xff]  ;;  %v254_v55 = vld [vmem:[#allocation5 + $0x500] sm:$0x3] }
  0x20   :  { %921 = vmatpush.xpose.msra.mxu0 %v246_v24  ;;  %v257_v56 = vld [vmem:[#allocation5 + $0x518] sm:$0x3]  ;;  %v255_v57 = vld [vmem:[#allocation5 + $0x508] sm:$0x3]  ;;  %v112_v58 = vld [vmem:[#allocation5 + $0x90] sm:$0xff] }
  0x21   :  { %981 = vmatpush.xpose.msra.mxu3 %v249_v25  ;;  %941 = vmatpush.xpose.msra.mxu1 %v247_v26  ;;  %v64_v63 = vld [vmem:[#allocation2 + $0x30] sm:$0xff]  ;;  %v110_v0 = vld [vmem:[#allocation5 + $0x80] sm:$0xff]  ;;  %v113_v1 = vld [vmem:[#allocation5 + $0x98] sm:$0xff] }
  0x22   :  { %883 = vmatmul.f32.vlgmr.msrb.gmra.mxu2 %v431_v27  ;;  %843 = vmatmul.f32.vlgmr.msrb.gmra.mxu0 %v429_v29  ;;  %v437_v38 = vld.sshfl [vmem:[#allocation1 + $0x10] sm:$0xff pattern:$0x73625140]  ;;  %v435_v40 = vld.sshfl [vmem:[#allocation1] sm:$0xff pattern:$0x73625140] }
  0x23   :  { %962 = vmatpush.xpose.msra.mxu2 %v104_v28  ;;  %903 = vmatmul.f32.vlgmr.msrb.gmra.mxu3 %v432_v30  ;;  %v438_v41 = vld.sshfl [vmem:[#allocation1 + $0x18] sm:$0xff pattern:$0x73625140]  ;;  %v436_v42 = vld.sshfl [vmem:[#allocation1 + $0x8] sm:$0xff pattern:$0x73625140] }
  0x24   :  { %863 = vmatmul.f32.vlgmr.msrb.gmra.mxu1 %v430_v31  ;;  %922 = vmatpush.xpose.msra.mxu0 %v102_v33  ;;  %443 = vst [vmem:[#allocation1] ss:$4 sm:$0xff] %v62_v44  ;;  %v260_v2 = vld [vmem:[#allocation5 + $0x530] sm:$0x3]  ;;  %v258_v3 = vld [vmem:[#allocation5 + $0x520] sm:$0x3] }
  0x25   :  { %982 = vmatpush.xpose.msra.mxu3 %v105_v34  ;;  %942 = vmatpush.xpose.msra.mxu1 %v103_v37  ;;  %v441_v49 = vld.sshfl [vmem:[#allocation1 + $0x30] sm:$0xff pattern:$0x73625140]  ;;  %v439_v50 = vld.sshfl [vmem:[#allocation1 + $0x20] sm:$0xff pattern:$0x73625140] }
  0x26   :  { %v442_v51 = vld.sshfl [vmem:[#allocation1 + $0x38] sm:$0xff pattern:$0x73625140]  ;;  %v440_v53 = vld.sshfl [vmem:[#allocation1 + $0x28] sm:$0xff pattern:$0x73625140] }
  0x27   :  { %1041 = vmatpush.xpose.msrb.mxu2 %v252_v35  ;;  %444 = vst [vmem:[#allocation1 + $0x20] ss:$4 sm:$0xff] %v63_v54  ;;  %v111_v4 = vld [vmem:[#allocation5 + $0x88] sm:$0xff]  ;;  %v261_v5 = vld [vmem:[#allocation5 + $0x538] sm:$0x3]  ;;  %v116_v12 = vld [vmem:[#allocation5 + $0xb0] sm:$0xff] }
  0x28   :  { %1001 = vmatpush.xpose.msrb.mxu0 %v250_v36  ;;  %v259_v9 = vld [vmem:[#allocation5 + $0x528] sm:$0x3]  ;;  %v65_v11 = vld [vmem:[#allocation2 + $0x38] sm:$0xff]  ;;  %v114_v13 = vld [vmem:[#allocation5 + $0xa0] sm:$0xff] }
  0x29   :  { %1061 = vmatpush.xpose.msrb.mxu3 %v253_v39  ;;  %1021 = vmatpush.xpose.msrb.mxu1 %v251_v43  ;;  %v117_v14 = vld [vmem:[#allocation5 + $0xb8] sm:$0xff]  ;;  %v115_v15 = vld [vmem:[#allocation5 + $0xa8] sm:$0xff]  ;;  %v264_v16 = vld [vmem:[#allocation5 + $0x550] sm:$0x3] }
  0x2a   :  { %963 = vmatmul.f32.vlgmr.msra.gmra.mxu2 %v437_v38  ;;  %923 = vmatmul.f32.vlgmr.msra.gmra.mxu0 %v435_v40  ;;  %v262_v18 = vld [vmem:[#allocation5 + $0x540] sm:$0x3]  ;;  %v265_v21 = vld [vmem:[#allocation5 + $0x558] sm:$0x3]  ;;  %v263_v24 = vld [vmem:[#allocation5 + $0x548] sm:$0x3] }
  0x2b   :  { %1042 = vmatpush.xpose.msrb.mxu2 %v108_v45  ;;  %983 = vmatmul.f32.vlgmr.msra.gmra.mxu3 %v438_v41  ;;  %v447_v59 = vld.sshfl [vmem:[#allocation1 + $0x10] sm:$0xff pattern:$0x73625140]  ;;  %v445_v60 = vld.sshfl [vmem:[#allocation1] sm:$0xff pattern:$0x73625140] }
  0x2c   :  { %943 = vmatmul.f32.vlgmr.msra.gmra.mxu1 %v436_v42  ;;  %1002 = vmatpush.xpose.msrb.mxu0 %v106_v46  ;;  %v448_v61 = vld.sshfl [vmem:[#allocation1 + $0x18] sm:$0xff pattern:$0x73625140]  ;;  %v446_v62 = vld.sshfl [vmem:[#allocation1 + $0x8] sm:$0xff pattern:$0x73625140] }
  0x2d   :  { %1062 = vmatpush.xpose.msrb.mxu3 %v109_v47  ;;  %1022 = vmatpush.xpose.msrb.mxu1 %v107_v48  ;;  %453 = vst [vmem:[#allocation1] ss:$4 sm:$0xff] %v64_v63  ;;  %v66_v23 = vld [vmem:[#allocation2 + $0x40] sm:$0xff]  ;;  %v67_v25 = vld [vmem:[#allocation2 + $0x48] sm:$0xff]  ;;  %v120_v30 = vld [vmem:[#allocation5 + $0xd0] sm:$0xff] }
  0x2e   :  { %v451_v6 = vld.sshfl [vmem:[#allocation1 + $0x30] sm:$0xff pattern:$0x73625140]  ;;  %v449_v7 = vld.sshfl [vmem:[#allocation1 + $0x20] sm:$0xff pattern:$0x73625140] }
  0x2f   :  { %1121 = vmatpush.xpose.msra.mxu2 %v256_v52  ;;  %v452_v8 = vld.sshfl [vmem:[#allocation1 + $0x38] sm:$0xff pattern:$0x73625140]  ;;  %v450_v10 = vld.sshfl [vmem:[#allocation1 + $0x28] sm:$0xff pattern:$0x73625140] }
  0x30   :  { %1081 = vmatpush.xpose.msra.mxu0 %v254_v55  ;;  %454 = vst [vmem:[#allocation1 + $0x20] ss:$4 sm:$0xff] %v65_v11  ;;  %v118_v31 = vld [vmem:[#allocation5 + $0xc0] sm:$0xff]  ;;  %v121_v32 = vld [vmem:[#allocation5 + $0xd8] sm:$0xff]  ;;  %v119_v33 = vld [vmem:[#allocation5 + $0xc8] sm:$0xff] }
  0x31   :  { %1141 = vmatpush.xpose.msra.mxu3 %v257_v56  ;;  %1101 = vmatpush.xpose.msra.mxu1 %v255_v57  ;;  %v268_v34 = vld [vmem:[#allocation5 + $0x570] sm:$0x3]  ;;  %v266_v35 = vld [vmem:[#allocation5 + $0x560] sm:$0x3]  ;;  %v269_v36 = vld [vmem:[#allocation5 + $0x578] sm:$0x3] }
  0x32   :  { %1043 = vmatmul.f32.vlgmr.msrb.gmra.mxu2 %v441_v49  ;;  %1003 = vmatmul.f32.vlgmr.msrb.gmra.mxu0 %v439_v50  ;;  %v267_v37 = vld [vmem:[#allocation5 + $0x568] sm:$0x3]  ;;  %v124_v38 = vld [vmem:[#allocation5 + $0xf0] sm:$0xff]  ;;  %v122_v44 = vld [vmem:[#allocation5 + $0xe0] sm:$0xff] }
  0x33   :  { %1122 = vmatpush.xpose.msra.mxu2 %v112_v58  ;;  %1063 = vmatmul.f32.vlgmr.msrb.gmra.mxu3 %v442_v51  ;;  %v68_v39 = vld [vmem:[#allocation2 + $0x50] sm:$0xff]  ;;  %v125_v48 = vld [vmem:[#allocation5 + $0xf8] sm:$0xff]  ;;  %v123_v51 = vld [vmem:[#allocation5 + $0xe8] sm:$0xff] }
  0x34   :  { %1023 = vmatmul.f32.vlgmr.msrb.gmra.mxu1 %v440_v53  ;;  %1082 = vmatpush.xpose.msra.mxu0 %v110_v0  ;;  %v457_v17 = vld.sshfl [vmem:[#allocation1 + $0x10] sm:$0xff pattern:$0x73625140]  ;;  %v455_v19 = vld.sshfl [vmem:[#allocation1] sm:$0xff pattern:$0x73625140] }
  0x35   :  { %1142 = vmatpush.xpose.msra.mxu3 %v113_v1  ;;  %1102 = vmatpush.xpose.msra.mxu1 %v111_v4  ;;  %v458_v20 = vld.sshfl [vmem:[#allocation1 + $0x18] sm:$0xff pattern:$0x73625140]  ;;  %v456_v22 = vld.sshfl [vmem:[#allocation1 + $0x8] sm:$0xff pattern:$0x73625140] }
  0x36   :  { %463 = vst [vmem:[#allocation1] ss:$4 sm:$0xff] %v66_v23  ;;  %v69_v50 = vld [vmem:[#allocation2 + $0x58] sm:$0xff]  ;;  %v272_v52 = vld [vmem:[#allocation5 + $0x590] sm:$0x3]  ;;  %v126_v57 = vld [vmem:[#allocation5 + $0x100] sm:$0xff] }
  0x37   :  { %1201 = vmatpush.xpose.msrb.mxu2 %v260_v2  ;;  %v3808_v26 = vld.sshfl [vmem:[#allocation1 + $0x30] sm:$0xff pattern:$0x73625140]  ;;  %v3810_v27 = vld.sshfl [vmem:[#allocation1 + $0x20] sm:$0xff pattern:$0x73625140] }
  0x38   :  { %1161 = vmatpush.xpose.msrb.mxu0 %v258_v3  ;;  %v3812_v28 = vld.sshfl [vmem:[#allocation1 + $0x38] sm:$0xff pattern:$0x73625140]  ;;  %v3814_v29 = vld.sshfl [vmem:[#allocation1 + $0x28] sm:$0xff pattern:$0x73625140] }
  0x39   :  { %1221 = vmatpush.xpose.msrb.mxu3 %v261_v5  ;;  %1181 = vmatpush.xpose.msrb.mxu1 %v259_v9  ;;  %464 = vst [vmem:[#allocation1 + $0x20] ss:$4 sm:$0xff] %v67_v25  ;;  %v270_v53 = vld [vmem:[#allocation5 + $0x580] sm:$0x3]  ;;  %v273_v54 = vld [vmem:[#allocation5 + $0x598] sm:$0x3] }
  0x3a   :  { %1123 = vmatmul.f32.vlgmr.msra.gmra.mxu2 %v447_v59  ;;  %1083 = vmatmul.f32.vlgmr.msra.gmra.mxu0 %v445_v60  ;;  %v271_v55 = vld [vmem:[#allocation5 + $0x588] sm:$0x3]  ;;  %v128_v56 = vld [vmem:[#allocation5 + $0x110] sm:$0xff]  ;;  %v129_v58 = vld [vmem:[#allocation5 + $0x118] sm:$0xff] }
  0x3b   :  { %1202 = vmatpush.xpose.msrb.mxu2 %v116_v12  ;;  %1143 = vmatmul.f32.vlgmr.msra.gmra.mxu3 %v448_v61  ;;  %v127_v59 = vld [vmem:[#allocation5 + $0x108] sm:$0xff]  ;;  %v276_v60 = vld [vmem:[#allocation5 + $0x5b0] sm:$0x3]  ;;  %v274_v61 = vld [vmem:[#allocation5 + $0x5a0] sm:$0x3] }
  0x3c   :  { %1103 = vmatmul.f32.vlgmr.msra.gmra.mxu1 %v446_v62  ;;  %1162 = vmatpush.xpose.msrb.mxu0 %v114_v13  ;;  %v277_v62 = vld [vmem:[#allocation5 + $0x5b8] sm:$0x3]  ;;  %v275_v63 = vld [vmem:[#allocation5 + $0x5a8] sm:$0x3]  ;;  %v70_v0 = vld [vmem:[#allocation2 + $0x60] sm:$0xff] }
  0x3d   :  { %1222 = vmatpush.xpose.msrb.mxu3 %v117_v14  ;;  %1182 = vmatpush.xpose.msrb.mxu1 %v115_v15  ;;  %v3816_v40 = vld.sshfl [vmem:[#allocation1 + $0x10] sm:$0xff pattern:$0x73625140]  ;;  %v3818_v41 = vld.sshfl [vmem:[#allocation1] sm:$0xff pattern:$0x73625140] }
  0x3e   :  { %v3820_v42 = vld.sshfl [vmem:[#allocation1 + $0x18] sm:$0xff pattern:$0x73625140]  ;;  %v3822_v43 = vld.sshfl [vmem:[#allocation1 + $0x8] sm:$0xff pattern:$0x73625140] }
  0x3f   :  { %1281 = vmatpush.xpose.msra.mxu2 %v264_v16  ;;  %473 = vst [vmem:[#allocation1] ss:$4 sm:$0xff] %v68_v39  ;;  %v132_v5 = vld [vmem:[#allocation5 + $0x130] sm:$0xff]  ;;  %v71_v12 = vld [vmem:[#allocation2 + $0x68] sm:$0xff]  ;;  %v278_v15 = vld [vmem:[#allocation5 + $0x5c0] sm:$0x3] }
  0x40   :  { %1241 = vmatpush.xpose.msra.mxu0 %v262_v18  ;;  %v3824_v45 = vld.sshfl [vmem:[#allocation1 + $0x30] sm:$0xff pattern:$0x73625140]  ;;  %v3826_v46 = vld.sshfl [vmem:[#allocation1 + $0x20] sm:$0xff pattern:$0x73625140] }
  0x41   :  { %1301 = vmatpush.xpose.msra.mxu3 %v265_v21  ;;  %1261 = vmatpush.xpose.msra.mxu1 %v263_v24  ;;  %v3828_v47 = vld.sshfl [vmem:[#allocation1 + $0x38] sm:$0xff pattern:$0x73625140]  ;;  %v3830_v49 = vld.sshfl [vmem:[#allocation1 + $0x28] sm:$0xff pattern:$0x73625140] }
  0x42   :  { %1203 = vmatmul.f32.vlgmr.msrb.gmra.mxu2 %v451_v6  ;;  %1163 = vmatmul.f32.vlgmr.msrb.gmra.mxu0 %v449_v7  ;;  %474 = vst [vmem:[#allocation1 + $0x20] ss:$4 sm:$0xff] %v69_v50  ;;  %v130_v6 = vld [vmem:[#allocation5 + $0x120] sm:$0xff]  ;;  %v131_v13 = vld [vmem:[#allocation5 + $0x128] sm:$0xff]  ;;  %v280_v14 = vld [vmem:[#allocation5 + $0x5d0] sm:$0x3] }
  0x43   :  { %1282 = vmatpush.xpose.msra.mxu2 %v120_v30  ;;  %1223 = vmatmul.f32.vlgmr.msrb.gmra.mxu3 %v452_v8  ;;  %v281_v16 = vld [vmem:[#allocation5 + $0x5d8] sm:$0x3]  ;;  %v136_v18 = vld [vmem:[#allocation5 + $0x150] sm:$0xff]  ;;  %v135_v21 = vld [vmem:[#allocation5 + $0x148] sm:$0xff] }
  0x44   :  { %1183 = vmatmul.f32.vlgmr.msrb.gmra.mxu1 %v450_v10  ;;  %1242 = vmatpush.xpose.msra.mxu0 %v118_v31  ;;  %v133_v10 = vld [vmem:[#allocation5 + $0x138] sm:$0xff]  ;;  %v282_v23 = vld [vmem:[#allocation5 + $0x5e0] sm:$0x3]  ;;  %v283_v25 = vld [vmem:[#allocation5 + $0x5e8] sm:$0x3] }
  0x45   :  { %1302 = vmatpush.xpose.msra.mxu3 %v121_v32  ;;  %1262 = vmatpush.xpose.msra.mxu1 %v119_v33  ;;  %v285_v24 = vld [vmem:[#allocation5 + $0x5f8] sm:$0x3]  ;;  %v140_v31 = vld [vmem:[#allocation5 + $0x170] sm:$0xff]  ;;  %v138_v32 = vld [vmem:[#allocation5 + $0x160] sm:$0xff] }
  0x46   :  { %v3836_v1 = vld.sshfl [vmem:[#allocation1 + $0x10] sm:$0xff pattern:$0x73625140]  ;;  %v3838_v2 = vld.sshfl [vmem:[#allocation1] sm:$0xff pattern:$0x73625140] }
  0x47   :  { %1361 = vmatpush.xpose.msrb.mxu2 %v268_v34  ;;  %v3840_v3 = vld.sshfl [vmem:[#allocation1 + $0x18] sm:$0xff pattern:$0x73625140]  ;;  %v3842_v4 = vld.sshfl [vmem:[#allocation1 + $0x8] sm:$0xff pattern:$0x73625140] }
  0x48   :  { %1321 = vmatpush.xpose.msrb.mxu0 %v266_v35  ;;  %483 = vst [vmem:[#allocation1] ss:$4 sm:$0xff] %v70_v0  ;;  %v139_v39 = vld [vmem:[#allocation5 + $0x168] sm:$0xff]  ;;  %v293_v50 = vld [vmem:[#allocation5 + $0x638] sm:$0x3] }
  0x49   :  { %1381 = vmatpush.xpose.msrb.mxu3 %v269_v36  ;;  %1341 = vmatpush.xpose.msrb.mxu1 %v267_v37  ;;  %v3844_v7 = vld.sshfl [vmem:[#allocation1 + $0x30] sm:$0xff pattern:$0x73625140]  ;;  %v3846_v8 = vld.sshfl [vmem:[#allocation1 + $0x20] sm:$0xff pattern:$0x73625140] }
  0x4a   :  { %1283 = vmatmul.f32.vlgmr.msra.gmra.mxu2 %v457_v17  ;;  %1243 = vmatmul.f32.vlgmr.msra.gmra.mxu0 %v455_v19  ;;  %v3848_v9 = vld.sshfl [vmem:[#allocation1 + $0x38] sm:$0xff pattern:$0x73625140]  ;;  %v3850_v11 = vld.sshfl [vmem:[#allocation1 + $0x28] sm:$0xff pattern:$0x73625140] }
  0x4b   :  { %1362 = vmatpush.xpose.msrb.mxu2 %v124_v38  ;;  %1303 = vmatmul.f32.vlgmr.msra.gmra.mxu3 %v458_v20  ;;  %484 = vst [vmem:[#allocation1 + $0x20] ss:$4 sm:$0xff] %v71_v12  ;;  %v279_v17 = vld [vmem:[#allocation5 + $0x5c8] sm:$0x3]  ;;  %v134_v19 = vld [vmem:[#allocation5 + $0x140] sm:$0xff]  ;;  %v137_v20 = vld [vmem:[#allocation5 + $0x158] sm:$0xff] }
  0x4c   :  { %1263 = vmatmul.f32.vlgmr.msra.gmra.mxu1 %v456_v22  ;;  %1322 = vmatpush.xpose.msrb.mxu0 %v122_v44  ;;  %v284_v22 = vld [vmem:[#allocation5 + $0x5f0] sm:$0x3]  ;;  %v141_v36 = vld [vmem:[#allocation5 + $0x178] sm:$0xff]  ;;  %v75_v0 = vld [vmem:[#allocation2 + $0x88] sm:$0xff] }
  0x4d   :  { %1382 = vmatpush.xpose.msrb.mxu3 %v125_v48  ;;  %1342 = vmatpush.xpose.msrb.mxu1 %v123_v51  ;;  %v73_v38 = vld [vmem:[#allocation2 + $0x78] sm:$0xff]  ;;  %v144_v44 = vld [vmem:[#allocation5 + $0x190] sm:$0xff]  ;;  %v291_v51 = vld [vmem:[#allocation5 + $0x628] sm:$0x3] }
  0x4e   :  { %v292_v48 = vld [vmem:[#allocation5 + $0x630] sm:$0x3] }
  0x4f   :  { %1441 = vmatpush.xpose.msra.mxu2 %v272_v52  ;;  %v3866_v30 = vld.sshfl [vmem:[#allocation1 + $0x8] sm:$0xff pattern:$0x73625140] }
  0x50   :  { %1401 = vmatpush.xpose.msra.mxu0 %v270_v53  ;;  %v74_v52 = vld [vmem:[#allocation2 + $0x80] sm:$0xff] }
  0x51   :  { %1461 = vmatpush.xpose.msra.mxu3 %v273_v54  ;;  %1421 = vmatpush.xpose.msra.mxu1 %v271_v55 }
  0x52   :  { %1363 = vmatmul.f32.vlgmr.msrb.gmra.mxu2 %v3808_v26  ;;  %1323 = vmatmul.f32.vlgmr.msrb.gmra.mxu0 %v3810_v27  ;;  %v72_v26 = vld [vmem:[#allocation2 + $0x70] sm:$0xff]  ;;  %v3860_v27 = vld.sshfl [vmem:[#allocation1 + $0x10] sm:$0xff pattern:$0x73625140] }
  0x53   :  { %1442 = vmatpush.xpose.msra.mxu2 %v128_v56  ;;  %1383 = vmatmul.f32.vlgmr.msrb.gmra.mxu3 %v3812_v28  ;;  %v3862_v28 = vld.sshfl [vmem:[#allocation1] sm:$0xff pattern:$0x73625140]  ;;  %v3868_v33 = vld.sshfl [vmem:[#allocation1 + $0x30] sm:$0xff pattern:$0x73625140] }
  0x54   :  { %1343 = vmatmul.f32.vlgmr.msrb.gmra.mxu1 %v3814_v29  ;;  %1402 = vmatpush.xpose.msra.mxu0 %v126_v57  ;;  %v3864_v29 = vld.sshfl [vmem:[#allocation1 + $0x18] sm:$0xff pattern:$0x73625140]  ;;  %v3870_v34 = vld.sshfl [vmem:[#allocation1 + $0x20] sm:$0xff pattern:$0x73625140] }
  0x55   :  { %1462 = vmatpush.xpose.msra.mxu3 %v129_v58  ;;  %1422 = vmatpush.xpose.msra.mxu1 %v127_v59  ;;  %493 = vst [vmem:[#allocation1] ss:$4 sm:$0xff] %v72_v26  ;;  %v3872_v35 = vld.sshfl [vmem:[#allocation1 + $0x38] sm:$0xff pattern:$0x73625140]  ;;  %v146_v58 = vld [vmem:[#allocation5 + $0x1a0] sm:$0xff] }
  0x56   :  { %v3874_v37 = vld.sshfl [vmem:[#allocation1 + $0x28] sm:$0xff pattern:$0x73625140]  ;;  %v148_v57 = vld [vmem:[#allocation5 + $0x1b0] sm:$0xff]  ;;  %v77_v26 = vld [vmem:[#allocation2 + $0x98] sm:$0xff] }
  0x57   :  { %1521 = vmatpush.xpose.msrb.mxu2 %v276_v60  ;;  %494 = vst [vmem:[#allocation1 + $0x20] ss:$4 sm:$0xff] %v73_v38 }
  0x58   :  { %1481 = vmatpush.xpose.msrb.mxu0 %v274_v61 }
  0x59   :  { %1541 = vmatpush.xpose.msrb.mxu3 %v277_v62  ;;  %1501 = vmatpush.xpose.msrb.mxu1 %v275_v63  ;;  %v149_v62 = vld [vmem:[#allocation5 + $0x1b8] sm:$0xff] }
  0x5a   :  { %1443 = vmatmul.f32.vlgmr.msra.gmra.mxu2 %v3816_v40  ;;  %1403 = vmatmul.f32.vlgmr.msra.gmra.mxu0 %v3818_v41  ;;  %v288_v40 = vld [vmem:[#allocation5 + $0x610] sm:$0x3]  ;;  %v286_v41 = vld [vmem:[#allocation5 + $0x600] sm:$0x3] }
  0x5b   :  { %1522 = vmatpush.xpose.msrb.mxu2 %v132_v5  ;;  %1463 = vmatmul.f32.vlgmr.msra.gmra.mxu3 %v3820_v42  ;;  %v289_v42 = vld [vmem:[#allocation5 + $0x618] sm:$0x3]  ;;  %v295_v5 = vld [vmem:[#allocation5 + $0x648] sm:$0x3] }
  0x5c   :  { %1423 = vmatmul.f32.vlgmr.msra.gmra.mxu1 %v3822_v43  ;;  %1482 = vmatpush.xpose.msrb.mxu0 %v130_v6  ;;  %v287_v43 = vld [vmem:[#allocation5 + $0x608] sm:$0x3]  ;;  %v3886_v54 = vld.sshfl [vmem:[#allocation1] sm:$0xff pattern:$0x73625140]  ;;  %v152_v6 = vld [vmem:[#allocation5 + $0x1d0] sm:$0xff] }
  0x5d   :  { %1542 = vmatpush.xpose.msrb.mxu3 %v133_v10  ;;  %1502 = vmatpush.xpose.msrb.mxu1 %v131_v13  ;;  %v3884_v53 = vld.sshfl [vmem:[#allocation1 + $0x10] sm:$0xff pattern:$0x73625140]  ;;  %v3888_v55 = vld.sshfl [vmem:[#allocation1 + $0x18] sm:$0xff pattern:$0x73625140] }
  0x5e   :  { %v3890_v56 = vld.sshfl [vmem:[#allocation1 + $0x8] sm:$0xff pattern:$0x73625140]  ;;  %v3892_v59 = vld.sshfl [vmem:[#allocation1 + $0x30] sm:$0xff pattern:$0x73625140] }
  0x5f   :  { %1601 = vmatpush.xpose.msra.mxu2 %v280_v14  ;;  %503 = vst [vmem:[#allocation1] ss:$4 sm:$0xff] %v74_v52  ;;  %v3894_v60 = vld.sshfl [vmem:[#allocation1 + $0x20] sm:$0xff pattern:$0x73625140]  ;;  %v76_v13 = vld [vmem:[#allocation2 + $0x90] sm:$0xff] }
  0x60   :  { %1561 = vmatpush.xpose.msra.mxu0 %v278_v15  ;;  %v3896_v61 = vld.sshfl [vmem:[#allocation1 + $0x38] sm:$0xff pattern:$0x73625140]  ;;  %v3898_v63 = vld.sshfl [vmem:[#allocation1 + $0x28] sm:$0xff pattern:$0x73625140] }
  0x61   :  { %1621 = vmatpush.xpose.msra.mxu3 %v281_v16  ;;  %1581 = vmatpush.xpose.msra.mxu1 %v279_v17  ;;  %504 = vst [vmem:[#allocation1 + $0x20] ss:$4 sm:$0xff] %v75_v0  ;;  %v151_v14 = vld [vmem:[#allocation5 + $0x1c8] sm:$0xff]  ;;  %v300_v15 = vld [vmem:[#allocation5 + $0x670] sm:$0x3] }
  0x62   :  { %1523 = vmatmul.f32.vlgmr.msrb.gmra.mxu2 %v3824_v45  ;;  %1483 = vmatmul.f32.vlgmr.msrb.gmra.mxu0 %v3826_v46  ;;  %v142_v45 = vld [vmem:[#allocation5 + $0x180] sm:$0xff]  ;;  %v145_v46 = vld [vmem:[#allocation5 + $0x198] sm:$0xff] }
  0x63   :  { %1602 = vmatpush.xpose.msra.mxu2 %v136_v18  ;;  %1543 = vmatmul.f32.vlgmr.msrb.gmra.mxu3 %v3828_v47  ;;  %v143_v47 = vld [vmem:[#allocation5 + $0x188] sm:$0xff]  ;;  %v298_v16 = vld [vmem:[#allocation5 + $0x660] sm:$0x3]  ;;  %v301_v17 = vld [vmem:[#allocation5 + $0x678] sm:$0x3] }
  0x64   :  { %1503 = vmatmul.f32.vlgmr.msrb.gmra.mxu1 %v3830_v49  ;;  %1562 = vmatpush.xpose.msra.mxu0 %v134_v19  ;;  %v290_v49 = vld [vmem:[#allocation5 + $0x620] sm:$0x3]  ;;  %v299_v18 = vld [vmem:[#allocation5 + $0x668] sm:$0x3]  ;;  %v156_v19 = vld [vmem:[#allocation5 + $0x1f0] sm:$0xff] }
  0x65   :  { %1622 = vmatpush.xpose.msra.mxu3 %v137_v20  ;;  %1582 = vmatpush.xpose.msra.mxu1 %v135_v21  ;;  %v154_v20 = vld [vmem:[#allocation5 + $0x1e0] sm:$0xff] }
  0x66   :  { %v3908_v10 = vld.sshfl [vmem:[#allocation1 + $0x18] sm:$0xff pattern:$0x73625140]  ;;  %v3910_v12 = vld.sshfl [vmem:[#allocation1 + $0x8] sm:$0xff pattern:$0x73625140] }
  0x67   :  { %1681 = vmatpush.xpose.msrb.mxu2 %v284_v22 }
  0x68   :  { %1641 = vmatpush.xpose.msrb.mxu0 %v282_v23  ;;  %v3916_v21 = vld.sshfl [vmem:[#allocation1 + $0x30] sm:$0xff pattern:$0x73625140]  ;;  %v3918_v22 = vld.sshfl [vmem:[#allocation1 + $0x20] sm:$0xff pattern:$0x73625140] }
  0x69   :  { %1701 = vmatpush.xpose.msrb.mxu3 %v285_v24  ;;  %1661 = vmatpush.xpose.msrb.mxu1 %v283_v25  ;;  %v3920_v23 = vld.sshfl [vmem:[#allocation1 + $0x38] sm:$0xff pattern:$0x73625140]  ;;  %v157_v24 = vld [vmem:[#allocation5 + $0x1f8] sm:$0xff] }
  0x6a   :  { %1603 = vmatmul.f32.vlgmr.msra.gmra.mxu2 %v3836_v1  ;;  %1563 = vmatmul.f32.vlgmr.msra.gmra.mxu0 %v3838_v2  ;;  %v147_v1 = vld [vmem:[#allocation5 + $0x1a8] sm:$0xff]  ;;  %v296_v2 = vld [vmem:[#allocation5 + $0x650] sm:$0x3]  ;;  %v3922_v25 = vld.sshfl [vmem:[#allocation1 + $0x28] sm:$0xff pattern:$0x73625140] }
  0x6b   :  { %1682 = vmatpush.xpose.msrb.mxu2 %v140_v31  ;;  %1623 = vmatmul.f32.vlgmr.msra.gmra.mxu3 %v3840_v3  ;;  %v294_v3 = vld [vmem:[#allocation5 + $0x640] sm:$0x3]  ;;  %514 = vst [vmem:[#allocation1 + $0x20] ss:$4 sm:$0xff] %v77_v26  ;;  %v303_v31 = vld [vmem:[#allocation5 + $0x688] sm:$0x3] }
  0x6c   :  { %1583 = vmatmul.f32.vlgmr.msra.gmra.mxu1 %v3842_v4  ;;  %1642 = vmatpush.xpose.msrb.mxu0 %v138_v32  ;;  %v297_v4 = vld [vmem:[#allocation5 + $0x658] sm:$0x3]  ;;  %v160_v32 = vld [vmem:[#allocation5 + $0x210] sm:$0xff] }
  0x6d   :  { %1702 = vmatpush.xpose.msrb.mxu3 %v141_v36  ;;  %1662 = vmatpush.xpose.msrb.mxu1 %v139_v39  ;;  %v78_v39 = vld [vmem:[#allocation2 + $0xa0] sm:$0xff] }
  0x6f   :  { %1761 = vmatpush.xpose.msra.mxu2 %v288_v40  ;;  %v159_v40 = vld [vmem:[#allocation5 + $0x208] sm:$0xff] }
  0x70   :  { %1721 = vmatpush.xpose.msra.mxu0 %v286_v41  ;;  %v308_v41 = vld [vmem:[#allocation5 + $0x6b0] sm:$0x3] }
  0x71   :  { %1781 = vmatpush.xpose.msra.mxu3 %v289_v42  ;;  %1741 = vmatpush.xpose.msra.mxu1 %v287_v43  ;;  %v306_v42 = vld [vmem:[#allocation5 + $0x6a0] sm:$0x3]  ;;  %v309_v43 = vld [vmem:[#allocation5 + $0x6b8] sm:$0x3] }
  0x72   :  { %1683 = vmatmul.f32.vlgmr.msrb.gmra.mxu2 %v3844_v7  ;;  %1643 = vmatmul.f32.vlgmr.msrb.gmra.mxu0 %v3846_v8  ;;  %v150_v7 = vld [vmem:[#allocation5 + $0x1c0] sm:$0xff]  ;;  %v3904_v8 = vld.sshfl [vmem:[#allocation1 + $0x10] sm:$0xff pattern:$0x73625140] }
  0x73   :  { %1762 = vmatpush.xpose.msra.mxu2 %v144_v44  ;;  %1703 = vmatmul.f32.vlgmr.msrb.gmra.mxu3 %v3848_v9  ;;  %v3906_v9 = vld.sshfl [vmem:[#allocation1] sm:$0xff pattern:$0x73625140]  ;;  %v3666_v44 = vld [vmem:[#allocation7] ss:$0 sm:$0xff] }
  0x74   :  { %1663 = vmatmul.f32.vlgmr.msrb.gmra.mxu1 %v3850_v11  ;;  %1722 = vmatpush.xpose.msra.mxu0 %v142_v45  ;;  %v153_v11 = vld [vmem:[#allocation5 + $0x1d8] sm:$0xff]  ;;  %513 = vst [vmem:[#allocation1] ss:$4 sm:$0xff] %v76_v13  ;;  %v307_v45 = vld [vmem:[#allocation5 + $0x6a8] sm:$0x3] }
  0x75   :  { %1782 = vmatpush.xpose.msra.mxu3 %v145_v46  ;;  %1742 = vmatpush.xpose.msra.mxu1 %v143_v47  ;;  %v164_v46 = vld [vmem:[#allocation5 + $0x230] sm:$0xff]  ;;  %v3942_v52 = vld.sshfl [vmem:[#allocation1 + $0x20] sm:$0xff pattern:$0x73625140] }
  0x77   :  { %1841 = vmatpush.xpose.msrb.mxu2 %v292_v48  ;;  %v162_v48 = vld [vmem:[#allocation5 + $0x220] sm:$0xff] }
  0x78   :  { %1801 = vmatpush.xpose.msrb.mxu0 %v290_v49  ;;  %v3940_v49 = vld.sshfl [vmem:[#allocation1 + $0x30] sm:$0xff pattern:$0x73625140] }
  0x79   :  { %1861 = vmatpush.xpose.msrb.mxu3 %v293_v50  ;;  %1821 = vmatpush.xpose.msrb.mxu1 %v291_v51 }
  0x7a   :  { %1763 = vmatmul.f32.vlgmr.msra.gmra.mxu2 %v3860_v27  ;;  %1723 = vmatmul.f32.vlgmr.msra.gmra.mxu0 %v3862_v28  ;;  %v155_v27 = vld [vmem:[#allocation5 + $0x1e8] sm:$0xff]  ;;  %v304_v28 = vld [vmem:[#allocation5 + $0x690] sm:$0x3] }
  0x7b   :  { %1842 = vmatpush.xpose.msrb.mxu2 %v148_v57  ;;  %1783 = vmatmul.f32.vlgmr.msra.gmra.mxu3 %v3864_v29  ;;  %v302_v29 = vld [vmem:[#allocation5 + $0x680] sm:$0x3]  ;;  %v3932_v36 = vld.sshfl [vmem:[#allocation1 + $0x18] sm:$0xff pattern:$0x73625140] }
  0x7c   :  { %1743 = vmatmul.f32.vlgmr.msra.gmra.mxu1 %v3866_v30  ;;  %1802 = vmatpush.xpose.msrb.mxu0 %v146_v58  ;;  %v305_v30 = vld [vmem:[#allocation5 + $0x698] sm:$0x3]  ;;  %v3934_v38 = vld.sshfl [vmem:[#allocation1 + $0x8] sm:$0xff pattern:$0x73625140]  ;;  %v163_v58 = vld [vmem:[#allocation5 + $0x228] sm:$0xff] }
  0x7d   :  { %1862 = vmatpush.xpose.msrb.mxu3 %v149_v62  ;;  %1822 = vmatpush.xpose.msrb.mxu1 %v147_v1  ;;  %v311_v62 = vld [vmem:[#allocation5 + $0x6c8] sm:$0x3] }
  0x7f   :  { %1921 = vmatpush.xpose.msra.mxu2 %v296_v2  ;;  %v168_v2 = vld [vmem:[#allocation5 + $0x250] sm:$0xff] }
  0x80   :  { %1881 = vmatpush.xpose.msra.mxu0 %v294_v3 }
  0x81   :  { %1941 = vmatpush.xpose.msra.mxu3 %v297_v4  ;;  %1901 = vmatpush.xpose.msra.mxu1 %v295_v5  ;;  %v166_v4 = vld [vmem:[#allocation5 + $0x240] sm:$0xff] }
  0x82   :  { %1843 = vmatmul.f32.vlgmr.msrb.gmra.mxu2 %v3868_v33  ;;  %1803 = vmatmul.f32.vlgmr.msrb.gmra.mxu0 %v3870_v34  ;;  %v158_v33 = vld [vmem:[#allocation5 + $0x200] sm:$0xff]  ;;  %v3928_v34 = vld.sshfl [vmem:[#allocation1 + $0x10] sm:$0xff pattern:$0x73625140] }
  0x83   :  { %1922 = vmatpush.xpose.msra.mxu2 %v152_v6  ;;  %1863 = vmatmul.f32.vlgmr.msrb.gmra.mxu3 %v3872_v35  ;;  %v3930_v35 = vld.sshfl [vmem:[#allocation1] sm:$0xff pattern:$0x73625140] }
  0x84   :  { %1823 = vmatmul.f32.vlgmr.msrb.gmra.mxu1 %v3874_v37  ;;  %1882 = vmatpush.xpose.msra.mxu0 %v150_v7  ;;  %v161_v37 = vld [vmem:[#allocation5 + $0x218] sm:$0xff]  ;;  %523 = vst [vmem:[#allocation1] ss:$4 sm:$0xff] %v78_v39  ;;  %v171_v39 = vld [vmem:[#allocation5 + $0x268] sm:$0xff] }
  0x85   :  { %1942 = vmatpush.xpose.msra.mxu3 %v153_v11  ;;  %1902 = vmatpush.xpose.msra.mxu1 %v151_v14  ;;  %v167_v14 = vld [vmem:[#allocation5 + $0x248] sm:$0xff] }
  0x87   :  { %2001 = vmatpush.xpose.msrb.mxu2 %v300_v15  ;;  %v316_v15 = vld [vmem:[#allocation5 + $0x6f0] sm:$0x3] }
  0x88   :  { %1961 = vmatpush.xpose.msrb.mxu0 %v298_v16  ;;  %v314_v16 = vld [vmem:[#allocation5 + $0x6e0] sm:$0x3] }
  0x89   :  { %2021 = vmatpush.xpose.msrb.mxu3 %v301_v17  ;;  %1981 = vmatpush.xpose.msrb.mxu1 %v299_v18  ;;  %v317_v17 = vld [vmem:[#allocation5 + $0x6f8] sm:$0x3] }
  0x8a   :  { %1923 = vmatmul.f32.vlgmr.msra.gmra.mxu2 %v3884_v53  ;;  %1883 = vmatmul.f32.vlgmr.msra.gmra.mxu0 %v3886_v54  ;;  %v3944_v53 = vld.sshfl [vmem:[#allocation1 + $0x38] sm:$0xff pattern:$0x73625140]  ;;  %v165_v54 = vld [vmem:[#allocation5 + $0x238] sm:$0xff] }
  0x8b   :  { %2002 = vmatpush.xpose.msrb.mxu2 %v156_v19  ;;  %1943 = vmatmul.f32.vlgmr.msra.gmra.mxu3 %v3888_v55  ;;  %v3946_v55 = vld.sshfl [vmem:[#allocation1 + $0x28] sm:$0xff pattern:$0x73625140]  ;;  %v3952_v5 = vld.sshfl [vmem:[#allocation1 + $0x10] sm:$0xff pattern:$0x73625140] }
  0x8c   :  { %1903 = vmatmul.f32.vlgmr.msra.gmra.mxu1 %v3890_v56  ;;  %1962 = vmatpush.xpose.msrb.mxu0 %v154_v20  ;;  %v79_v56 = vld [vmem:[#allocation2 + $0xa8] sm:$0xff]  ;;  %v3958_v11 = vld.sshfl [vmem:[#allocation1 + $0x8] sm:$0xff pattern:$0x73625140] }
  0x8d   :  { %2022 = vmatpush.xpose.msrb.mxu3 %v157_v24  ;;  %1982 = vmatpush.xpose.msrb.mxu1 %v155_v27  ;;  %524 = vst [vmem:[#allocation1 + $0x20] ss:$4 sm:$0xff] %v79_v56  ;;  %v315_v19 = vld [vmem:[#allocation5 + $0x6e8] sm:$0x3]  ;;  %v170_v27 = vld [vmem:[#allocation5 + $0x260] sm:$0xff]  ;;  %v177_v56 = vld [vmem:[#allocation5 + $0x298] sm:$0xff] }
  0x8f   :  { %2081 = vmatpush.xpose.msra.mxu2 %v304_v28 }
  0x90   :  { %2041 = vmatpush.xpose.msra.mxu0 %v302_v29 }
  0x91   :  { %2101 = vmatpush.xpose.msra.mxu3 %v305_v30  ;;  %2061 = vmatpush.xpose.msra.mxu1 %v303_v31  ;;  %v173_v31 = vld [vmem:[#allocation5 + $0x278] sm:$0xff] }
  0x92   :  { %2003 = vmatmul.f32.vlgmr.msrb.gmra.mxu2 %v3892_v59  ;;  %1963 = vmatmul.f32.vlgmr.msrb.gmra.mxu0 %v3894_v60  ;;  %v312_v59 = vld [vmem:[#allocation5 + $0x6d0] sm:$0x3]  ;;  %v310_v60 = vld [vmem:[#allocation5 + $0x6c0] sm:$0x3] }
  0x93   :  { %2082 = vmatpush.xpose.msra.mxu2 %v160_v32  ;;  %2023 = vmatmul.f32.vlgmr.msrb.gmra.mxu3 %v3896_v61  ;;  %v313_v61 = vld [vmem:[#allocation5 + $0x6d8] sm:$0x3] }
  0x94   :  { %1983 = vmatmul.f32.vlgmr.msrb.gmra.mxu1 %v3898_v63  ;;  %2042 = vmatpush.xpose.msra.mxu0 %v158_v33  ;;  %v3966_v29 = vld.sshfl [vmem:[#allocation1 + $0x20] sm:$0xff pattern:$0x73625140]  ;;  %v3968_v30 = vld.sshfl [vmem:[#allocation1 + $0x38] sm:$0xff pattern:$0x73625140] }
  0x95   :  { %2102 = vmatpush.xpose.msra.mxu3 %v161_v37  ;;  %2062 = vmatpush.xpose.msra.mxu1 %v159_v40  ;;  %v3970_v32 = vld.sshfl [vmem:[#allocation1 + $0x28] sm:$0xff pattern:$0x73625140]  ;;  %v81_v33 = vld [vmem:[#allocation2 + $0xb8] sm:$0xff]  ;;  %v320_v40 = vld [vmem:[#allocation5 + $0x710] sm:$0x3] }
  0x97   :  { %2161 = vmatpush.xpose.msrb.mxu2 %v308_v41  ;;  %v764_v47 = vpop.f32.mrf.mxu0  ;;  %v318_v41 = vld [vmem:[#allocation5 + $0x700] sm:$0x3] }
  0x98   :  { %2121 = vmatpush.xpose.msrb.mxu0 %v306_v42  ;;  %v765_v50 = vadd.f32 %v3666_v44, %v764_v47  ;;  %v321_v42 = vld [vmem:[#allocation5 + $0x718] sm:$0x3]  ;;  %v319_v44 = vld [vmem:[#allocation5 + $0x708] sm:$0x3] }
  0x99   :  { %2181 = vmatpush.xpose.msrb.mxu3 %v309_v43  ;;  %2141 = vmatpush.xpose.msrb.mxu1 %v307_v45  ;;  %v784_v51 = vpop.f32.mrf.mxu1 }
  0x9a   :  { %2083 = vmatmul.f32.vlgmr.msra.gmra.mxu2 %v3904_v8  ;;  %v785_v57 = vadd.f32 %v784_v51, %v765_v50  ;;  %2043 = vmatmul.f32.vlgmr.msra.gmra.mxu0 %v3906_v9  ;;  %v3954_v8 = vld.sshfl [vmem:[#allocation1] sm:$0xff pattern:$0x73625140]  ;;  %v3956_v9 = vld.sshfl [vmem:[#allocation1 + $0x18] sm:$0xff pattern:$0x73625140] }
  0x9b   :  { %2162 = vmatpush.xpose.msrb.mxu2 %v164_v46  ;;  %2103 = vmatmul.f32.vlgmr.msra.gmra.mxu3 %v3908_v10  ;;  %v169_v10 = vld [vmem:[#allocation5 + $0x258] sm:$0xff] }
  0x9c   :  { %2063 = vmatmul.f32.vlgmr.msra.gmra.mxu1 %v3910_v12  ;;  %2122 = vmatpush.xpose.msrb.mxu0 %v162_v48  ;;  %v80_v12 = vld [vmem:[#allocation2 + $0xb0] sm:$0xff]  ;;  %v174_v48 = vld [vmem:[#allocation5 + $0x280] sm:$0xff] }
  0x9d   :  { %2182 = vmatpush.xpose.msrb.mxu3 %v165_v54  ;;  %v804_v63 = vpop.f32.mrf.mxu2  ;;  %2142 = vmatpush.xpose.msrb.mxu1 %v163_v58  ;;  %533 = vst [vmem:[#allocation1] ss:$4 sm:$0xff] %v80_v12  ;;  %v82_v58 = vld [vmem:[#allocation2 + $0xc0] sm:$0xff] }
  0x9e   :  { %v805_v0 = vadd.f32 %v804_v63, %v785_v57  ;;  %v824_v1 = vpop.f32.mrf.mxu3  ;;  %v325_v63 = vld [vmem:[#allocation5 + $0x738] sm:$0x3] }
  0x9f   :  { %2241 = vmatpush.xpose.msra.mxu2 %v312_v59  ;;  %v844_v3 = vpop.f32.mrf.mxu0 }
  0xa0   :  { %2201 = vmatpush.xpose.msra.mxu0 %v310_v60  ;;  %v825_v6 = vadd.f32 %v824_v1, %v805_v0  ;;  %v175_v60 = vld [vmem:[#allocation5 + $0x288] sm:$0xff] }
  0xa1   :  { %2261 = vmatpush.xpose.msra.mxu3 %v313_v61  ;;  %2221 = vmatpush.xpose.msra.mxu1 %v311_v62  ;;  %v864_v7 = vpop.f32.mrf.mxu1  ;;  %v324_v61 = vld [vmem:[#allocation5 + $0x730] sm:$0x3]  ;;  %v322_v62 = vld [vmem:[#allocation5 + $0x720] sm:$0x3]  ;;  %v323_v1 = vld [vmem:[#allocation5 + $0x728] sm:$0x3] }
  0xa2   :  { %v845_v13 = vadd.f32 %v844_v3, %v825_v6  ;;  %2163 = vmatmul.f32.vlgmr.msrb.gmra.mxu2 %v3916_v21  ;;  %2123 = vmatmul.f32.vlgmr.msrb.gmra.mxu0 %v3918_v22  ;;  %v172_v22 = vld [vmem:[#allocation5 + $0x270] sm:$0xff]  ;;  %v178_v6 = vld [vmem:[#allocation5 + $0x2a0] sm:$0xff] }
  0xa3   :  { %2242 = vmatpush.xpose.msra.mxu2 %v168_v2  ;;  %2183 = vmatmul.f32.vlgmr.msrb.gmra.mxu3 %v3920_v23  ;;  %v3964_v23 = vld.sshfl [vmem:[#allocation1 + $0x30] sm:$0xff pattern:$0x73625140] }
  0xa4   :  { %2143 = vmatmul.f32.vlgmr.msrb.gmra.mxu1 %v3922_v25  ;;  %v865_v18 = vadd.f32 %v864_v7, %v845_v13  ;;  %2202 = vmatpush.xpose.msra.mxu0 %v166_v4  ;;  %534 = vst [vmem:[#allocation1 + $0x20] ss:$4 sm:$0xff] %v81_v33  ;;  %v3978_v51 = vld.sshfl [vmem:[#allocation1] sm:$0xff pattern:$0x73625140] }
  0xa5   :  { %2262 = vmatpush.xpose.msra.mxu3 %v169_v10  ;;  %v884_v20 = vpop.f32.mrf.mxu2  ;;  %2222 = vmatpush.xpose.msra.mxu1 %v167_v14  ;;  %v3980_v54 = vld.sshfl [vmem:[#allocation1 + $0x18] sm:$0xff pattern:$0x73625140]  ;;  %v3982_v57 = vld.sshfl [vmem:[#allocation1 + $0x8] sm:$0xff pattern:$0x73625140] }
  0xa6   :  { %v885_v24 = vadd.f32 %v884_v20, %v865_v18  ;;  %v904_v21 = vpop.f32.mrf.mxu3  ;;  %v181_v13 = vld [vmem:[#allocation5 + $0x2b8] sm:$0xff]  ;;  %v328_v18 = vld [vmem:[#allocation5 + $0x750] sm:$0x3] }
  0xa7   :  { %2321 = vmatpush.xpose.msrb.mxu2 %v316_v15  ;;  %v924_v26 = vpop.f32.mrf.mxu0  ;;  %v83_v15 = vld [vmem:[#allocation2 + $0xc8] sm:$0xff]  ;;  %v329_v20 = vld [vmem:[#allocation5 + $0x758] sm:$0x3] }
  0xa8   :  { %2281 = vmatpush.xpose.msrb.mxu0 %v314_v16  ;;  %v905_v25 = vadd.f32 %v904_v21, %v885_v24  ;;  %v327_v21 = vld [vmem:[#allocation5 + $0x748] sm:$0x3] }
  0xa9   :  { %2341 = vmatpush.xpose.msrb.mxu3 %v317_v17  ;;  %2301 = vmatpush.xpose.msrb.mxu1 %v315_v19  ;;  %v944_v28 = vpop.f32.mrf.mxu1  ;;  %v179_v17 = vld [vmem:[#allocation5 + $0x2a8] sm:$0xff]  ;;  %v326_v19 = vld [vmem:[#allocation5 + $0x740] sm:$0x3] }
  0xaa   :  { %v925_v37 = vadd.f32 %v924_v26, %v905_v25  ;;  %2243 = vmatmul.f32.vlgmr.msra.gmra.mxu2 %v3928_v34  ;;  %2203 = vmatmul.f32.vlgmr.msra.gmra.mxu0 %v3930_v35  ;;  %v176_v35 = vld [vmem:[#allocation5 + $0x290] sm:$0xff]  ;;  %v182_v25 = vld [vmem:[#allocation5 + $0x2c0] sm:$0xff] }
  0xab   :  { %2322 = vmatpush.xpose.msrb.mxu2 %v172_v22  ;;  %2263 = vmatmul.f32.vlgmr.msra.gmra.mxu3 %v3932_v36  ;;  %v3976_v36 = vld.sshfl [vmem:[#allocation1 + $0x10] sm:$0xff pattern:$0x73625140]  ;;  %v3990_v10 = vld.sshfl [vmem:[#allocation1 + $0x20] sm:$0xff pattern:$0x73625140] }
  0xac   :  { %2223 = vmatmul.f32.vlgmr.msra.gmra.mxu1 %v3934_v38  ;;  %v945_v43 = vadd.f32 %v944_v28, %v925_v37  ;;  %2282 = vmatpush.xpose.msrb.mxu0 %v170_v27  ;;  %543 = vst [vmem:[#allocation1] ss:$4 sm:$0xff] %v82_v58  ;;  %v3992_v12 = vld.sshfl [vmem:[#allocation1 + $0x38] sm:$0xff pattern:$0x73625140]  ;;  %v185_v37 = vld [vmem:[#allocation5 + $0x2d8] sm:$0xff] }
  0xad   :  { %2342 = vmatpush.xpose.msrb.mxu3 %v173_v31  ;;  %v964_v45 = vpop.f32.mrf.mxu2  ;;  %2302 = vmatpush.xpose.msrb.mxu1 %v171_v39  ;;  %v3994_v14 = vld.sshfl [vmem:[#allocation1 + $0x28] sm:$0xff pattern:$0x73625140] }
  0xae   :  { %v965_v46 = vadd.f32 %v964_v45, %v945_v43  ;;  %v984_v34 = vpop.f32.mrf.mxu3  ;;  %v332_v43 = vld [vmem:[#allocation5 + $0x770] sm:$0x3]  ;;  %v333_v45 = vld [vmem:[#allocation5 + $0x778] sm:$0x3] }
  0xaf   :  { %2401 = vmatpush.xpose.msra.mxu2 %v320_v40  ;;  %v1004_v47 = vpop.f32.mrf.mxu0  ;;  %v84_v40 = vld [vmem:[#allocation2 + $0xd0] sm:$0xff] }
  0xb0   :  { %2361 = vmatpush.xpose.msra.mxu0 %v318_v41  ;;  %v985_v38 = vadd.f32 %v984_v34, %v965_v46  ;;  %v331_v34 = vld [vmem:[#allocation5 + $0x768] sm:$0x3] }
  0xb1   :  { %2421 = vmatpush.xpose.msra.mxu3 %v321_v42  ;;  %2381 = vmatpush.xpose.msra.mxu1 %v319_v44  ;;  %v1024_v50 = vpop.f32.mrf.mxu1  ;;  %v183_v42 = vld [vmem:[#allocation5 + $0x2c8] sm:$0xff]  ;;  %v330_v44 = vld [vmem:[#allocation5 + $0x760] sm:$0x3] }
  0xb2   :  { %v1005_v59 = vadd.f32 %v1004_v47, %v985_v38  ;;  %2323 = vmatmul.f32.vlgmr.msrb.gmra.mxu2 %v3940_v49  ;;  %2283 = vmatmul.f32.vlgmr.msrb.gmra.mxu0 %v3942_v52  ;;  %v180_v52 = vld [vmem:[#allocation5 + $0x2b0] sm:$0xff]  ;;  %v186_v38 = vld [vmem:[#allocation5 + $0x2e0] sm:$0xff] }
  0xb3   :  { %2402 = vmatpush.xpose.msra.mxu2 %v176_v35  ;;  %2343 = vmatmul.f32.vlgmr.msrb.gmra.mxu3 %v3944_v53  ;;  %v3988_v53 = vld.sshfl [vmem:[#allocation1 + $0x30] sm:$0xff pattern:$0x73625140]  ;;  %v4002_v31 = vld.sshfl [vmem:[#allocation1] sm:$0xff pattern:$0x73625140] }
  0xb4   :  { %2303 = vmatmul.f32.vlgmr.msrb.gmra.mxu1 %v3946_v55  ;;  %v1025_v0 = vadd.f32 %v1024_v50, %v1005_v59  ;;  %2362 = vmatpush.xpose.msra.mxu0 %v174_v48  ;;  %544 = vst [vmem:[#allocation1 + $0x20] ss:$4 sm:$0xff] %v83_v15  ;;  %v4004_v33 = vld.sshfl [vmem:[#allocation1 + $0x18] sm:$0xff pattern:$0x73625140]  ;;  %v189_v59 = vld [vmem:[#allocation5 + $0x2f8] sm:$0xff] }
  0xb5   :  { %2422 = vmatpush.xpose.msra.mxu3 %v177_v56  ;;  %v1044_v2 = vpop.f32.mrf.mxu2  ;;  %2382 = vmatpush.xpose.msra.mxu1 %v175_v60  ;;  %v4006_v39 = vld.sshfl [vmem:[#allocation1 + $0x8] sm:$0xff pattern:$0x73625140] }
  0xb6   :  { %v1045_v3 = vadd.f32 %v1044_v2, %v1025_v0  ;;  %v1064_v49 = vpop.f32.mrf.mxu3  ;;  %v336_v0 = vld [vmem:[#allocation5 + $0x790] sm:$0x3]  ;;  %v337_v2 = vld [vmem:[#allocation5 + $0x798] sm:$0x3] }
  0xb7   :  { %2481 = vmatpush.xpose.msrb.mxu2 %v324_v61  ;;  %v1084_v4 = vpop.f32.mrf.mxu0  ;;  %v85_v61 = vld [vmem:[#allocation2 + $0xd8] sm:$0xff] }
  0xb8   :  { %2441 = vmatpush.xpose.msrb.mxu0 %v322_v62  ;;  %v1065_v55 = vadd.f32 %v1064_v49, %v1045_v3  ;;  %v335_v49 = vld [vmem:[#allocation5 + $0x788] sm:$0x3] }
  0xb9   :  { %2501 = vmatpush.xpose.msrb.mxu3 %v325_v63  ;;  %2461 = vmatpush.xpose.msrb.mxu1 %v323_v1  ;;  %v1104_v7 = vpop.f32.mrf.mxu1  ;;  %v187_v63 = vld [vmem:[#allocation5 + $0x2e8] sm:$0xff]  ;;  %v334_v1 = vld [vmem:[#allocation5 + $0x780] sm:$0x3] }
  0xba   :  { %v1085_v16 = vadd.f32 %v1084_v4, %v1065_v55  ;;  %2403 = vmatmul.f32.vlgmr.msra.gmra.mxu2 %v3952_v5  ;;  %2363 = vmatmul.f32.vlgmr.msra.gmra.mxu0 %v3954_v8  ;;  %v184_v8 = vld [vmem:[#allocation5 + $0x2d0] sm:$0xff]  ;;  %v190_v55 = vld [vmem:[#allocation5 + $0x300] sm:$0xff] }
  0xbb   :  { %2482 = vmatpush.xpose.msrb.mxu2 %v180_v52  ;;  %2423 = vmatmul.f32.vlgmr.msra.gmra.mxu3 %v3956_v9  ;;  %v4000_v9 = vld.sshfl [vmem:[#allocation1 + $0x10] sm:$0xff pattern:$0x73625140]  ;;  %v4014_v56 = vld.sshfl [vmem:[#allocation1 + $0x20] sm:$0xff pattern:$0x73625140] }
  0xbc   :  { %2383 = vmatmul.f32.vlgmr.msra.gmra.mxu1 %v3958_v11  ;;  %v1105_v24 = vadd.f32 %v1104_v7, %v1085_v16  ;;  %2442 = vmatpush.xpose.msrb.mxu0 %v178_v6  ;;  %553 = vst [vmem:[#allocation1] ss:$4 sm:$0xff] %v84_v40  ;;  %v4016_v58 = vld.sshfl [vmem:[#allocation1 + $0x38] sm:$0xff pattern:$0x73625140]  ;;  %v193_v16 = vld [vmem:[#allocation5 + $0x318] sm:$0xff] }
  0xbd   :  { %2502 = vmatpush.xpose.msrb.mxu3 %v181_v13  ;;  %v1124_v22 = vpop.f32.mrf.mxu2  ;;  %2462 = vmatpush.xpose.msrb.mxu1 %v179_v17  ;;  %v4018_v60 = vld.sshfl [vmem:[#allocation1 + $0x28] sm:$0xff pattern:$0x73625140] }
  0xbe   :  { %v1125_v26 = vadd.f32 %v1124_v22, %v1105_v24  ;;  %v1144_v5 = vpop.f32.mrf.mxu3  ;;  %v340_v24 = vld [vmem:[#allocation5 + $0x7b0] sm:$0x3]  ;;  %v341_v22 = vld [vmem:[#allocation5 + $0x7b8] sm:$0x3] }
  0xbf   :  { %2561 = vmatpush.xpose.msra.mxu2 %v328_v18  ;;  %v1164_v27 = vpop.f32.mrf.mxu0  ;;  %v86_v18 = vld [vmem:[#allocation2 + $0xe0] sm:$0xff] }
  0xc0   :  { %2521 = vmatpush.xpose.msra.mxu0 %v326_v19  ;;  %v1145_v11 = vadd.f32 %v1144_v5, %v1125_v26  ;;  %v339_v5 = vld [vmem:[#allocation5 + $0x7a8] sm:$0x3] }
  0xc1   :  { %2581 = vmatpush.xpose.msra.mxu3 %v329_v20  ;;  %2541 = vmatpush.xpose.msra.mxu1 %v327_v21  ;;  %v1184_v28 = vpop.f32.mrf.mxu1  ;;  %v191_v20 = vld [vmem:[#allocation5 + $0x308] sm:$0xff]  ;;  %v338_v21 = vld [vmem:[#allocation5 + $0x7a0] sm:$0x3] }
  0xc2   :  { %v1165_v41 = vadd.f32 %v1164_v27, %v1145_v11  ;;  %2483 = vmatmul.f32.vlgmr.msrb.gmra.mxu2 %v3964_v23  ;;  %2443 = vmatmul.f32.vlgmr.msrb.gmra.mxu0 %v3966_v29  ;;  %v188_v29 = vld [vmem:[#allocation5 + $0x2f0] sm:$0xff]  ;;  %v194_v11 = vld [vmem:[#allocation5 + $0x320] sm:$0xff] }
  0xc3   :  { %2562 = vmatpush.xpose.msra.mxu2 %v184_v8  ;;  %2503 = vmatmul.f32.vlgmr.msrb.gmra.mxu3 %v3968_v30  ;;  %v4012_v30 = vld.sshfl [vmem:[#allocation1 + $0x30] sm:$0xff pattern:$0x73625140]  ;;  %v4026_v13 = vld.sshfl [vmem:[#allocation1] sm:$0xff pattern:$0x73625140] }
  0xc4   :  { %2463 = vmatmul.f32.vlgmr.msrb.gmra.mxu1 %v3970_v32  ;;  %v1185_v46 = vadd.f32 %v1184_v28, %v1165_v41  ;;  %2522 = vmatpush.xpose.msra.mxu0 %v182_v25  ;;  %554 = vst [vmem:[#allocation1 + $0x20] ss:$4 sm:$0xff] %v85_v61  ;;  %v4028_v15 = vld.sshfl [vmem:[#allocation1 + $0x18] sm:$0xff pattern:$0x73625140]  ;;  %v197_v41 = vld [vmem:[#allocation5 + $0x338] sm:$0xff] }
  0xc5   :  { %2582 = vmatpush.xpose.msra.mxu3 %v185_v37  ;;  %v1204_v35 = vpop.f32.mrf.mxu2  ;;  %2542 = vmatpush.xpose.msra.mxu1 %v183_v42  ;;  %v4030_v17 = vld.sshfl [vmem:[#allocation1 + $0x8] sm:$0xff pattern:$0x73625140] }
  0xc6   :  { %v1205_v47 = vadd.f32 %v1204_v35, %v1185_v46  ;;  %v1224_v23 = vpop.f32.mrf.mxu3  ;;  %v344_v46 = vld [vmem:[#allocation5 + $0x7d0] sm:$0x3]  ;;  %v345_v35 = vld [vmem:[#allocation5 + $0x7d8] sm:$0x3] }
  0xc7   :  { %2641 = vmatpush.xpose.msrb.mxu2 %v332_v43  ;;  %v1244_v48 = vpop.f32.mrf.mxu0  ;;  %v87_v43 = vld [vmem:[#allocation2 + $0xe8] sm:$0xff] }
  0xc8   :  { %2601 = vmatpush.xpose.msrb.mxu0 %v330_v44  ;;  %v1225_v32 = vadd.f32 %v1224_v23, %v1205_v47  ;;  %v343_v23 = vld [vmem:[#allocation5 + $0x7c8] sm:$0x3] }
  0xc9   :  { %2661 = vmatpush.xpose.msrb.mxu3 %v333_v45  ;;  %2621 = vmatpush.xpose.msrb.mxu1 %v331_v34  ;;  %v1264_v50 = vpop.f32.mrf.mxu1  ;;  %v195_v45 = vld [vmem:[#allocation5 + $0x328] sm:$0xff]  ;;  %v342_v34 = vld [vmem:[#allocation5 + $0x7c0] sm:$0x3] }
  0xca   :  { %v1245_v62 = vadd.f32 %v1244_v48, %v1225_v32  ;;  %2563 = vmatmul.f32.vlgmr.msra.gmra.mxu2 %v3976_v36  ;;  %2523 = vmatmul.f32.vlgmr.msra.gmra.mxu0 %v3978_v51  ;;  %v192_v51 = vld [vmem:[#allocation5 + $0x310] sm:$0xff]  ;;  %v198_v32 = vld [vmem:[#allocation5 + $0x340] sm:$0xff] }
  0xcb   :  { %2642 = vmatpush.xpose.msrb.mxu2 %v188_v29  ;;  %2583 = vmatmul.f32.vlgmr.msra.gmra.mxu3 %v3980_v54  ;;  %v4024_v54 = vld.sshfl [vmem:[#allocation1 + $0x10] sm:$0xff pattern:$0x73625140]  ;;  %v4038_v37 = vld.sshfl [vmem:[#allocation1 + $0x20] sm:$0xff pattern:$0x73625140] }
  0xcc   :  { %2543 = vmatmul.f32.vlgmr.msra.gmra.mxu1 %v3982_v57  ;;  %v1265_v3 = vadd.f32 %v1264_v50, %v1245_v62  ;;  %2602 = vmatpush.xpose.msrb.mxu0 %v186_v38  ;;  %563 = vst [vmem:[#allocation1] ss:$4 sm:$0xff] %v86_v18  ;;  %v4040_v40 = vld.sshfl [vmem:[#allocation1 + $0x38] sm:$0xff pattern:$0x73625140]  ;;  %v201_v62 = vld [vmem:[#allocation5 + $0x358] sm:$0xff] }
  0xcd   :  { %2662 = vmatpush.xpose.msrb.mxu3 %v189_v59  ;;  %v1284_v52 = vpop.f32.mrf.mxu2  ;;  %2622 = vmatpush.xpose.msrb.mxu1 %v187_v63  ;;  %v4042_v42 = vld.sshfl [vmem:[#allocation1 + $0x28] sm:$0xff pattern:$0x73625140] }
  0xce   :  { %v1285_v4 = vadd.f32 %v1284_v52, %v1265_v3  ;;  %v1304_v36 = vpop.f32.mrf.mxu3  ;;  %v348_v3 = vld [vmem:[#allocation5 + $0x7f0] sm:$0x3]  ;;  %v349_v52 = vld [vmem:[#allocation5 + $0x7f8] sm:$0x3] }
  0xcf   :  { %2721 = vmatpush.xpose.msra.mxu2 %v336_v0  ;;  %v1324_v6 = vpop.f32.mrf.mxu0  ;;  %v88_v0 = vld [vmem:[#allocation2 + $0xf0] sm:$0xff] }
  0xd0   :  { %2681 = vmatpush.xpose.msra.mxu0 %v334_v1  ;;  %v1305_v57 = vadd.f32 %v1304_v36, %v1285_v4  ;;  %v347_v36 = vld [vmem:[#allocation5 + $0x7e8] sm:$0x3] }
  0xd1   :  { %2741 = vmatpush.xpose.msra.mxu3 %v337_v2  ;;  %2701 = vmatpush.xpose.msra.mxu1 %v335_v49  ;;  %v1344_v7 = vpop.f32.mrf.mxu1  ;;  %v199_v2 = vld [vmem:[#allocation5 + $0x348] sm:$0xff]  ;;  %v346_v49 = vld [vmem:[#allocation5 + $0x7e0] sm:$0x3] }
  0xd2   :  { %v1325_v19 = vadd.f32 %v1324_v6, %v1305_v57  ;;  %2643 = vmatmul.f32.vlgmr.msrb.gmra.mxu2 %v3988_v53  ;;  %2603 = vmatmul.f32.vlgmr.msrb.gmra.mxu0 %v3990_v10  ;;  %v196_v10 = vld [vmem:[#allocation5 + $0x330] sm:$0xff]  ;;  %v202_v57 = vld [vmem:[#allocation5 + $0x360] sm:$0xff] }
  0xd3   :  { %2722 = vmatpush.xpose.msra.mxu2 %v192_v51  ;;  %2663 = vmatmul.f32.vlgmr.msrb.gmra.mxu3 %v3992_v12  ;;  %v4036_v12 = vld.sshfl [vmem:[#allocation1 + $0x30] sm:$0xff pattern:$0x73625140]  ;;  %v4050_v59 = vld.sshfl [vmem:[#allocation1] sm:$0xff pattern:$0x73625140] }
  0xd4   :  { %2623 = vmatmul.f32.vlgmr.msrb.gmra.mxu1 %v3994_v14  ;;  %v1345_v26 = vadd.f32 %v1344_v7, %v1325_v19  ;;  %2682 = vmatpush.xpose.msra.mxu0 %v190_v55  ;;  %564 = vst [vmem:[#allocation1 + $0x20] ss:$4 sm:$0xff] %v87_v43  ;;  %v4052_v61 = vld.sshfl [vmem:[#allocation1 + $0x18] sm:$0xff pattern:$0x73625140]  ;;  %v205_v19 = vld [vmem:[#allocation5 + $0x378] sm:$0xff] }
  0xd5   :  { %2742 = vmatpush.xpose.msra.mxu3 %v193_v16  ;;  %v1364_v8 = vpop.f32.mrf.mxu2  ;;  %2702 = vmatpush.xpose.msra.mxu1 %v191_v20  ;;  %v4054_v63 = vld.sshfl [vmem:[#allocation1 + $0x8] sm:$0xff pattern:$0x73625140] }
  0xd6   :  { %v1365_v27 = vadd.f32 %v1364_v8, %v1345_v26  ;;  %v1384_v53 = vpop.f32.mrf.mxu3  ;;  %v352_v26 = vld [vmem:[#allocation5 + $0x810] sm:$0x3]  ;;  %v353_v8 = vld [vmem:[#allocation5 + $0x818] sm:$0x3] }
  0xd7   :  { %2801 = vmatpush.xpose.msrb.mxu2 %v340_v24  ;;  %v1404_v25 = vpop.f32.mrf.mxu0  ;;  %v89_v24 = vld [vmem:[#allocation2 + $0xf8] sm:$0xff] }
  0xd8   :  { %2761 = vmatpush.xpose.msrb.mxu0 %v338_v21  ;;  %v1385_v14 = vadd.f32 %v1384_v53, %v1365_v27  ;;  %v351_v53 = vld [vmem:[#allocation5 + $0x808] sm:$0x3] }
  0xd9   :  { %2821 = vmatpush.xpose.msrb.mxu3 %v341_v22  ;;  %2781 = vmatpush.xpose.msrb.mxu1 %v339_v5  ;;  %v1424_v28 = vpop.f32.mrf.mxu1  ;;  %v203_v22 = vld [vmem:[#allocation5 + $0x368] sm:$0xff]  ;;  %v350_v5 = vld [vmem:[#allocation5 + $0x800] sm:$0x3] }
  0xda   :  { %v1405_v44 = vadd.f32 %v1404_v25, %v1385_v14  ;;  %2723 = vmatmul.f32.vlgmr.msra.gmra.mxu2 %v4000_v9  ;;  %2683 = vmatmul.f32.vlgmr.msra.gmra.mxu0 %v4002_v31  ;;  %v200_v31 = vld [vmem:[#allocation5 + $0x350] sm:$0xff]  ;;  %v206_v14 = vld [vmem:[#allocation5 + $0x380] sm:$0xff] }
  0xdb   :  { %2802 = vmatpush.xpose.msrb.mxu2 %v196_v10  ;;  %2743 = vmatmul.f32.vlgmr.msra.gmra.mxu3 %v4004_v33  ;;  %v4048_v33 = vld.sshfl [vmem:[#allocation1 + $0x10] sm:$0xff pattern:$0x73625140]  ;;  %v4062_v16 = vld.sshfl [vmem:[#allocation1 + $0x20] sm:$0xff pattern:$0x73625140] }
  0xdc   :  { %2703 = vmatmul.f32.vlgmr.msra.gmra.mxu1 %v4006_v39  ;;  %v1425_v47 = vadd.f32 %v1424_v28, %v1405_v44  ;;  %2762 = vmatpush.xpose.msrb.mxu0 %v194_v11  ;;  %573 = vst [vmem:[#allocation1] ss:$4 sm:$0xff] %v88_v0  ;;  %v4064_v18 = vld.sshfl [vmem:[#allocation1 + $0x38] sm:$0xff pattern:$0x73625140]  ;;  %v209_v44 = vld [vmem:[#allocation5 + $0x398] sm:$0xff] }
  0xdd   :  { %2822 = vmatpush.xpose.msrb.mxu3 %v197_v41  ;;  %v1444_v29 = vpop.f32.mrf.mxu2  ;;  %2782 = vmatpush.xpose.msrb.mxu1 %v195_v45  ;;  %v4066_v20 = vld.sshfl [vmem:[#allocation1 + $0x28] sm:$0xff pattern:$0x73625140] }
  0xde   :  { %v1445_v48 = vadd.f32 %v1444_v29, %v1425_v47  ;;  %v1464_v9 = vpop.f32.mrf.mxu3  ;;  %v356_v47 = vld [vmem:[#allocation5 + $0x830] sm:$0x3]  ;;  %v357_v29 = vld [vmem:[#allocation5 + $0x838] sm:$0x3] }
  0xdf   :  { %2881 = vmatpush.xpose.msra.mxu2 %v344_v46  ;;  %v1484_v38 = vpop.f32.mrf.mxu0  ;;  %v90_v46 = vld [vmem:[#allocation2 + $0x100] sm:$0xff] }
  0xe0   :  { %2841 = vmatpush.xpose.msra.mxu0 %v342_v34  ;;  %v1465_v39 = vadd.f32 %v1464_v9, %v1445_v48  ;;  %v355_v9 = vld [vmem:[#allocation5 + $0x828] sm:$0x3] }
  0xe1   :  { %2901 = vmatpush.xpose.msra.mxu3 %v345_v35  ;;  %2861 = vmatpush.xpose.msra.mxu1 %v343_v23  ;;  %v1504_v50 = vpop.f32.mrf.mxu1  ;;  %v207_v35 = vld [vmem:[#allocation5 + $0x388] sm:$0xff]  ;;  %v354_v23 = vld [vmem:[#allocation5 + $0x820] sm:$0x3] }
  0xe2   :  { %v1485_v1 = vadd.f32 %v1484_v38, %v1465_v39  ;;  %2803 = vmatmul.f32.vlgmr.msrb.gmra.mxu2 %v4012_v30  ;;  %2763 = vmatmul.f32.vlgmr.msrb.gmra.mxu0 %v4014_v56  ;;  %v204_v56 = vld [vmem:[#allocation5 + $0x370] sm:$0xff]  ;;  %v210_v39 = vld [vmem:[#allocation5 + $0x3a0] sm:$0xff] }
  0xe3   :  { %2882 = vmatpush.xpose.msra.mxu2 %v200_v31  ;;  %2823 = vmatmul.f32.vlgmr.msrb.gmra.mxu3 %v4016_v58  ;;  %v4060_v58 = vld.sshfl [vmem:[#allocation1 + $0x30] sm:$0xff pattern:$0x73625140]  ;;  %v4074_v41 = vld.sshfl [vmem:[#allocation1] sm:$0xff pattern:$0x73625140] }
  0xe4   :  { %2783 = vmatmul.f32.vlgmr.msrb.gmra.mxu1 %v4018_v60  ;;  %v1505_v4 = vadd.f32 %v1504_v50, %v1485_v1  ;;  %2842 = vmatpush.xpose.msra.mxu0 %v198_v32  ;;  %574 = vst [vmem:[#allocation1 + $0x20] ss:$4 sm:$0xff] %v89_v24  ;;  %v4076_v43 = vld.sshfl [vmem:[#allocation1 + $0x18] sm:$0xff pattern:$0x73625140]  ;;  %v213_v1 = vld [vmem:[#allocation5 + $0x3b8] sm:$0xff] }
  0xe5   :  { %2902 = vmatpush.xpose.msra.mxu3 %v201_v62  ;;  %v1524_v51 = vpop.f32.mrf.mxu2  ;;  %2862 = vmatpush.xpose.msra.mxu1 %v199_v2  ;;  %v4078_v45 = vld.sshfl [vmem:[#allocation1 + $0x8] sm:$0xff pattern:$0x73625140] }
  0xe6   :  { %v1525_v6 = vadd.f32 %v1524_v51, %v1505_v4  ;;  %v1544_v30 = vpop.f32.mrf.mxu3  ;;  %v360_v4 = vld [vmem:[#allocation5 + $0x850] sm:$0x3]  ;;  %v361_v51 = vld [vmem:[#allocation5 + $0x858] sm:$0x3] }
  0xe7   :  { %2961 = vmatpush.xpose.msrb.mxu2 %v348_v3  ;;  %v1564_v55 = vpop.f32.mrf.mxu0  ;;  %v91_v3 = vld [vmem:[#allocation2 + $0x108] sm:$0xff] }
  0xe8   :  { %2921 = vmatpush.xpose.msrb.mxu0 %v346_v49  ;;  %v1545_v60 = vadd.f32 %v1544_v30, %v1525_v6  ;;  %v359_v30 = vld [vmem:[#allocation5 + $0x848] sm:$0x3] }
  0xe9   :  { %2981 = vmatpush.xpose.msrb.mxu3 %v349_v52  ;;  %2941 = vmatpush.xpose.msrb.mxu1 %v347_v36  ;;  %v1584_v7 = vpop.f32.mrf.mxu1  ;;  %v211_v52 = vld [vmem:[#allocation5 + $0x3a8] sm:$0xff]  ;;  %v358_v36 = vld [vmem:[#allocation5 + $0x840] sm:$0x3] }
  0xea   :  { %v1565_v21 = vadd.f32 %v1564_v55, %v1545_v60  ;;  %2883 = vmatmul.f32.vlgmr.msra.gmra.mxu2 %v4024_v54  ;;  %2843 = vmatmul.f32.vlgmr.msra.gmra.mxu0 %v4026_v13  ;;  %v208_v13 = vld [vmem:[#allocation5 + $0x390] sm:$0xff]  ;;  %v214_v60 = vld [vmem:[#allocation5 + $0x3c0] sm:$0xff] }
  0xeb   :  { %2962 = vmatpush.xpose.msrb.mxu2 %v204_v56  ;;  %2903 = vmatmul.f32.vlgmr.msra.gmra.mxu3 %v4028_v15  ;;  %v4072_v15 = vld.sshfl [vmem:[#allocation1 + $0x10] sm:$0xff pattern:$0x73625140]  ;;  %v4086_v62 = vld.sshfl [vmem:[#allocation1 + $0x20] sm:$0xff pattern:$0x73625140] }
  0xec   :  { %2863 = vmatmul.f32.vlgmr.msra.gmra.mxu1 %v4030_v17  ;;  %v1585_v27 = vadd.f32 %v1584_v7, %v1565_v21  ;;  %2922 = vmatpush.xpose.msrb.mxu0 %v202_v57  ;;  %583 = vst [vmem:[#allocation1] ss:$4 sm:$0xff] %v90_v46  ;;  %v4088_v0 = vld.sshfl [vmem:[#allocation1 + $0x38] sm:$0xff pattern:$0x73625140]  ;;  %v217_v21 = vld [vmem:[#allocation5 + $0x3d8] sm:$0xff] }
  0xed   :  { %2982 = vmatpush.xpose.msrb.mxu3 %v205_v19  ;;  %v1604_v10 = vpop.f32.mrf.mxu2  ;;  %2942 = vmatpush.xpose.msrb.mxu1 %v203_v22  ;;  %v4090_v2 = vld.sshfl [vmem:[#allocation1 + $0x28] sm:$0xff pattern:$0x73625140] }
  0xee   :  { %v1605_v25 = vadd.f32 %v1604_v10, %v1585_v27  ;;  %v1624_v54 = vpop.f32.mrf.mxu3  ;;  %v364_v27 = vld [vmem:[#allocation5 + $0x870] sm:$0x3]  ;;  %v365_v10 = vld [vmem:[#allocation5 + $0x878] sm:$0x3] }
  0xef   :  { %3041 = vmatpush.xpose.msra.mxu2 %v352_v26  ;;  %v1644_v11 = vpop.f32.mrf.mxu0  ;;  %v92_v26 = vld [vmem:[#allocation2 + $0x110] sm:$0xff] }
  0xf0   :  { %3001 = vmatpush.xpose.msra.mxu0 %v350_v5  ;;  %v1625_v17 = vadd.f32 %v1624_v54, %v1605_v25  ;;  %v363_v54 = vld [vmem:[#allocation5 + $0x868] sm:$0x3] }
  0xf1   :  { %3061 = vmatpush.xpose.msra.mxu3 %v353_v8  ;;  %3021 = vmatpush.xpose.msra.mxu1 %v351_v53  ;;  %v1664_v28 = vpop.f32.mrf.mxu1  ;;  %v215_v8 = vld [vmem:[#allocation5 + $0x3c8] sm:$0xff]  ;;  %v362_v53 = vld [vmem:[#allocation5 + $0x860] sm:$0x3] }
  0xf2   :  { %v1645_v34 = vadd.f32 %v1644_v11, %v1625_v17  ;;  %2963 = vmatmul.f32.vlgmr.msrb.gmra.mxu2 %v4036_v12  ;;  %2923 = vmatmul.f32.vlgmr.msrb.gmra.mxu0 %v4038_v37  ;;  %v212_v37 = vld [vmem:[#allocation5 + $0x3b0] sm:$0xff]  ;;  %v218_v17 = vld [vmem:[#allocation5 + $0x3e0] sm:$0xff] }
  0xf3   :  { %3042 = vmatpush.xpose.msra.mxu2 %v208_v13  ;;  %2983 = vmatmul.f32.vlgmr.msrb.gmra.mxu3 %v4040_v40  ;;  %v4084_v40 = vld.sshfl [vmem:[#allocation1 + $0x30] sm:$0xff pattern:$0x73625140]  ;;  %v4098_v19 = vld.sshfl [vmem:[#allocation1] sm:$0xff pattern:$0x73625140] }
  0xf4   :  { %2943 = vmatmul.f32.vlgmr.msrb.gmra.mxu1 %v4042_v42  ;;  %v1665_v48 = vadd.f32 %v1664_v28, %v1645_v34  ;;  %3002 = vmatpush.xpose.msra.mxu0 %v206_v14  ;;  %584 = vst [vmem:[#allocation1 + $0x20] ss:$4 sm:$0xff] %v91_v3  ;;  %v4100_v24 = vld.sshfl [vmem:[#allocation1 + $0x18] sm:$0xff pattern:$0x73625140]  ;;  %v221_v34 = vld [vmem:[#allocation5 + $0x3f8] sm:$0xff] }
  0xf5   :  { %3062 = vmatpush.xpose.msra.mxu3 %v209_v44  ;;  %v1684_v31 = vpop.f32.mrf.mxu2  ;;  %3022 = vmatpush.xpose.msra.mxu1 %v207_v35  ;;  %v4102_v22 = vld.sshfl [vmem:[#allocation1 + $0x8] sm:$0xff pattern:$0x73625140]  ;;  %v223_v3 = vld [vmem:[#allocation5 + $0x408] sm:$0xff] }
  0xf6   :  { %v1685_v38 = vadd.f32 %v1684_v31, %v1665_v48  ;;  %v1704_v12 = vpop.f32.mrf.mxu3  ;;  %v368_v48 = vld [vmem:[#allocation5 + $0x890] sm:$0x3]  ;;  %v369_v31 = vld [vmem:[#allocation5 + $0x898] sm:$0x3] }
  0xf7   :  { %3121 = vmatpush.xpose.msrb.mxu2 %v356_v47  ;;  %v1724_v32 = vpop.f32.mrf.mxu0  ;;  %v93_v47 = vld [vmem:[#allocation2 + $0x118] sm:$0xff] }
  0xf8   :  { %3081 = vmatpush.xpose.msrb.mxu0 %v354_v23  ;;  %v1705_v42 = vadd.f32 %v1704_v12, %v1685_v38  ;;  %v367_v12 = vld [vmem:[#allocation5 + $0x888] sm:$0x3] }
  0xf9   :  { %3141 = vmatpush.xpose.msrb.mxu3 %v357_v29  ;;  %3101 = vmatpush.xpose.msrb.mxu1 %v355_v9  ;;  %v1744_v50 = vpop.f32.mrf.mxu1  ;;  %v219_v29 = vld [vmem:[#allocation5 + $0x3e8] sm:$0xff]  ;;  %v366_v9 = vld [vmem:[#allocation5 + $0x880] sm:$0x3] }
  0xfa   :  { %v1725_v49 = vadd.f32 %v1724_v32, %v1705_v42  ;;  %3043 = vmatmul.f32.vlgmr.msra.gmra.mxu2 %v4048_v33  ;;  %3003 = vmatmul.f32.vlgmr.msra.gmra.mxu0 %v4050_v59  ;;  %v216_v59 = vld [vmem:[#allocation5 + $0x3d0] sm:$0xff] }
  0xfb   :  { %3122 = vmatpush.xpose.msrb.mxu2 %v212_v37  ;;  %3063 = vmatmul.f32.vlgmr.msra.gmra.mxu3 %v4052_v61  ;;  %v4096_v61 = vld.sshfl [vmem:[#allocation1 + $0x10] sm:$0xff pattern:$0x73625140]  ;;  %v4110_v44 = vld.sshfl [vmem:[#allocation1 + $0x20] sm:$0xff pattern:$0x73625140] }
  0xfc   :  { %3023 = vmatmul.f32.vlgmr.msra.gmra.mxu1 %v4054_v63  ;;  %v1745_v6 = vadd.f32 %v1744_v50, %v1725_v49  ;;  %3082 = vmatpush.xpose.msrb.mxu0 %v210_v39  ;;  %593 = vst [vmem:[#allocation1] ss:$4 sm:$0xff] %v92_v26  ;;  %v4112_v46 = vld.sshfl [vmem:[#allocation1 + $0x38] sm:$0xff pattern:$0x73625140]  ;;  %v225_v50 = vld [vmem:[#allocation5 + $0x418] sm:$0xff] }
  0xfd   :  { %3142 = vmatpush.xpose.msrb.mxu3 %v213_v1  ;;  %v1764_v56 = vpop.f32.mrf.mxu2  ;;  %3102 = vmatpush.xpose.msrb.mxu1 %v211_v52  ;;  %v4114_v35 = vld.sshfl [vmem:[#allocation1 + $0x28] sm:$0xff pattern:$0x73625140]  ;;  %v372_v49 = vld [vmem:[#allocation5 + $0x8b0] sm:$0x3] }
  0xfe   :  { %v1765_v55 = vadd.f32 %v1764_v56, %v1745_v6  ;;  %v1784_v33 = vpop.f32.mrf.mxu3  ;;  %v370_v52 = vld [vmem:[#allocation5 + $0x8a0] sm:$0x3]  ;;  %v375_v26 = vld [vmem:[#allocation5 + $0x8c8] sm:$0x3] }
  0xff   :  { %3201 = vmatpush.xpose.msra.mxu2 %v360_v4  ;;  %v1804_v57 = vpop.f32.mrf.mxu0  ;;  %v373_v4 = vld [vmem:[#allocation5 + $0x8b8] sm:$0x3] }
 0x100   :  { %3161 = vmatpush.xpose.msra.mxu0 %v358_v36  ;;  %v1785_v63 = vadd.f32 %v1784_v33, %v1765_v55  ;;  %v229_v33 = vld [vmem:[#allocation5 + $0x438] sm:$0xff] }
 0x101   :  { %3221 = vmatpush.xpose.msra.mxu3 %v361_v51  ;;  %3181 = vmatpush.xpose.msra.mxu1 %v359_v30  ;;  %v1824_v7 = vpop.f32.mrf.mxu1  ;;  %v371_v51 = vld [vmem:[#allocation5 + $0x8a8] sm:$0x3] }
 0x102   :  { %v1805_v5 = vadd.f32 %v1804_v57, %v1785_v63  ;;  %3123 = vmatmul.f32.vlgmr.msrb.gmra.mxu2 %v4060_v58  ;;  %3083 = vmatmul.f32.vlgmr.msrb.gmra.mxu0 %v4062_v16  ;;  %v220_v16 = vld [vmem:[#allocation5 + $0x3f0] sm:$0xff]  ;;  %v227_v57 = vld [vmem:[#allocation5 + $0x428] sm:$0xff]  ;;  %v374_v63 = vld [vmem:[#allocation5 + $0x8c0] sm:$0x3] }
 0x103   :  { %3202 = vmatpush.xpose.msra.mxu2 %v216_v59  ;;  %3143 = vmatmul.f32.vlgmr.msrb.gmra.mxu3 %v4064_v18  ;;  %v4108_v18 = vld.sshfl [vmem:[#allocation1 + $0x30] sm:$0xff pattern:$0x73625140] }
 0x104   :  { %3103 = vmatmul.f32.vlgmr.msrb.gmra.mxu1 %v4066_v20  ;;  %v1825_v25 = vadd.f32 %v1824_v7, %v1805_v5  ;;  %3162 = vmatpush.xpose.msra.mxu0 %v214_v60  ;;  %594 = vst [vmem:[#allocation1 + $0x20] ss:$4 sm:$0xff] %v93_v47  ;;  %v376_v60 = vld [vmem:[#allocation5 + $0x8d0] sm:$0x3]  ;;  %v377_v7 = vld [vmem:[#allocation5 + $0x8d8] sm:$0x3] }
 0x105   :  { %3222 = vmatpush.xpose.msra.mxu3 %v217_v21  ;;  %v1844_v13 = vpop.f32.mrf.mxu2  ;;  %3182 = vmatpush.xpose.msra.mxu1 %v215_v8  ;;  %v595_v47 = vld.sshfl [vmem:[#allocation1] sm:$0xff pattern:$0x73625140] }
 0x106   :  { %v1845_v11 = vadd.f32 %v1844_v13, %v1825_v25  ;;  %v1864_v58 = vpop.f32.mrf.mxu3  ;;  %v380_v13 = vld [vmem:[#allocation5 + $0x8f0] sm:$0x3] }
 0x107   :  { %3281 = vmatpush.xpose.msrb.mxu2 %v364_v27  ;;  %v1884_v14 = vpop.f32.mrf.mxu0 }
 0x108   :  { %3241 = vmatpush.xpose.msrb.mxu0 %v362_v53  ;;  %v1865_v20 = vadd.f32 %v1864_v58, %v1845_v11  ;;  %v378_v11 = vld [vmem:[#allocation5 + $0x8e0] sm:$0x3]  ;;  %v381_v58 = vld [vmem:[#allocation5 + $0x8f8] sm:$0x3] }
 0x109   :  { %3301 = vmatpush.xpose.msrb.mxu3 %v365_v10  ;;  %3261 = vmatpush.xpose.msrb.mxu1 %v363_v54  ;;  %v1904_v28 = vpop.f32.mrf.mxu1  ;;  %v233_v10 = vld [vmem:[#allocation5 + $0x458] sm:$0xff]  ;;  %v231_v54 = vld [vmem:[#allocation5 + $0x448] sm:$0xff] }
 0x10a   :  { %v1885_v23 = vadd.f32 %v1884_v14, %v1865_v20  ;;  %3203 = vmatmul.f32.vlgmr.msra.gmra.mxu2 %v4072_v15  ;;  %3163 = vmatmul.f32.vlgmr.msra.gmra.mxu0 %v4074_v41  ;;  %v224_v41 = vld [vmem:[#allocation5 + $0x410] sm:$0xff]  ;;  %v379_v14 = vld [vmem:[#allocation5 + $0x8e8] sm:$0x3] }
 0x10b   :  { %3282 = vmatpush.xpose.msrb.mxu2 %v220_v16  ;;  %3223 = vmatmul.f32.vlgmr.msra.gmra.mxu3 %v4076_v43 }
 0x10c   :  { %3183 = vmatmul.f32.vlgmr.msra.gmra.mxu1 %v4078_v45  ;;  %v1905_v38 = vadd.f32 %v1904_v28, %v1885_v23  ;;  %3242 = vmatpush.xpose.msrb.mxu0 %v218_v17  ;;  %v222_v45 = vld [vmem:[#allocation5 + $0x400] sm:$0xff]  ;;  %v598_v23 = vld.sshfl [vmem:[#allocation1 + $0x18] sm:$0xff pattern:$0x73625140] }
 0x10d   :  { %3302 = vmatpush.xpose.msrb.mxu3 %v221_v34  ;;  %v1924_v37 = vpop.f32.mrf.mxu2  ;;  %3262 = vmatpush.xpose.msrb.mxu1 %v219_v29  ;;  %v597_v34 = vld.sshfl [vmem:[#allocation1 + $0x10] sm:$0xff pattern:$0x73625140]  ;;  %v596_v29 = vld.sshfl [vmem:[#allocation1 + $0x8] sm:$0xff pattern:$0x73625140] }
 0x10e   :  { %v1925_v32 = vadd.f32 %v1924_v37, %v1905_v38  ;;  %v1944_v15 = vpop.f32.mrf.mxu3  ;;  %v235_v38 = vld [vmem:[#allocation5 + $0x468] sm:$0xff] }
 0x10f   :  { %3361 = vmatpush.xpose.msra.mxu2 %v368_v48  ;;  %v1964_v39 = vpop.f32.mrf.mxu0  ;;  %v234_v48 = vld [vmem:[#allocation5 + $0x460] sm:$0xff] }
 0x110   :  { %3321 = vmatpush.xpose.msra.mxu0 %v366_v9  ;;  %v1945_v42 = vadd.f32 %v1944_v15, %v1925_v32  ;;  %v237_v9 = vld [vmem:[#allocation5 + $0x478] sm:$0xff] }
 0x111   :  { %3381 = vmatpush.xpose.msra.mxu3 %v369_v31  ;;  %3341 = vmatpush.xpose.msra.mxu1 %v367_v12  ;;  %v1984_v43 = vpop.f32.mrf.mxu1 }
 0x112   :  { %v1965_v1 = vadd.f32 %v1964_v39, %v1945_v42  ;;  %3283 = vmatmul.f32.vlgmr.msrb.gmra.mxu2 %v4084_v40  ;;  %3243 = vmatmul.f32.vlgmr.msrb.gmra.mxu0 %v4086_v62  ;;  %v228_v40 = vld [vmem:[#allocation5 + $0x430] sm:$0xff]  ;;  %v601_v39 = vld.sshfl [vmem:[#allocation1 + $0x30] sm:$0xff pattern:$0x73625140] }
 0x113   :  { %3362 = vmatpush.xpose.msra.mxu2 %v224_v41  ;;  %3303 = vmatmul.f32.vlgmr.msrb.gmra.mxu3 %v4088_v0  ;;  %v599_v42 = vld.sshfl [vmem:[#allocation1 + $0x20] sm:$0xff pattern:$0x73625140] }
 0x114   :  { %3263 = vmatmul.f32.vlgmr.msrb.gmra.mxu1 %v4090_v2  ;;  %v1985_v36 = vadd.f32 %v1984_v43, %v1965_v1  ;;  %3322 = vmatpush.xpose.msra.mxu0 %v222_v45  ;;  %v226_v2 = vld [vmem:[#allocation5 + $0x420] sm:$0xff] }
 0x115   :  { %3382 = vmatpush.xpose.msra.mxu3 %v225_v50  ;;  %v2004_v6 = vpop.f32.mrf.mxu2  ;;  %3342 = vmatpush.xpose.msra.mxu1 %v223_v3  ;;  %v602_v50 = vld.sshfl [vmem:[#allocation1 + $0x38] sm:$0xff pattern:$0x73625140]  ;;  %v600_v1 = vld.sshfl [vmem:[#allocation1 + $0x28] sm:$0xff pattern:$0x73625140] }
 0x116   :  { %v2005_v30 = vadd.f32 %v2004_v6, %v1985_v36  ;;  %v2024_v56 = vpop.f32.mrf.mxu3 }
 0x117   :  { %3441 = vmatpush.xpose.msrb.mxu2 %v372_v49  ;;  %v2044_v62 = vpop.f32.mrf.mxu0 }
 0x118   :  { %3401 = vmatpush.xpose.msrb.mxu0 %v370_v52  ;;  %v2025_v55 = vadd.f32 %v2024_v56, %v2005_v30 }
 0x119   :  { %3461 = vmatpush.xpose.msrb.mxu3 %v373_v4  ;;  %3421 = vmatpush.xpose.msrb.mxu1 %v371_v51  ;;  %v2064_v0 = vpop.f32.mrf.mxu1 }
 0x11a   :  { %v2045_v59 = vadd.f32 %v2044_v62, %v2025_v55  ;;  %3363 = vmatmul.f32.vlgmr.msra.gmra.mxu2 %v4096_v61  ;;  %3323 = vmatmul.f32.vlgmr.msra.gmra.mxu0 %v4098_v19  ;;  %v232_v61 = vld [vmem:[#allocation5 + $0x450] sm:$0xff] }
 0x11b   :  { %3442 = vmatpush.xpose.msrb.mxu2 %v228_v40  ;;  %3383 = vmatmul.f32.vlgmr.msra.gmra.mxu3 %v4100_v24 }
 0x11c   :  { %3343 = vmatmul.f32.vlgmr.msra.gmra.mxu1 %v4102_v22  ;;  %v2065_v21 = vadd.f32 %v2064_v0, %v2045_v59  ;;  %3402 = vmatpush.xpose.msrb.mxu0 %v226_v2  ;;  %v230_v22 = vld [vmem:[#allocation5 + $0x440] sm:$0xff] }
 0x11d   :  { %3462 = vmatpush.xpose.msrb.mxu3 %v229_v33  ;;  %v2084_v5 = vpop.f32.mrf.mxu2  ;;  %3422 = vmatpush.xpose.msrb.mxu1 %v227_v57 }
 0x11e   :  { %v2085_v8 = vadd.f32 %v2084_v5, %v2065_v21  ;;  %v2104_v27 = vpop.f32.mrf.mxu3 }
 0x11f   :  { %3521 = vmatpush.xpose.msra.mxu2 %v376_v60  ;;  %v2124_v19 = vpop.f32.mrf.mxu0 }
 0x120   :  { %3481 = vmatpush.xpose.msra.mxu0 %v374_v63  ;;  %v2105_v53 = vadd.f32 %v2104_v27, %v2085_v8 }
 0x121   :  { %3541 = vmatpush.xpose.msra.mxu3 %v377_v7  ;;  %3501 = vmatpush.xpose.msra.mxu1 %v375_v26  ;;  %v2144_v24 = vpop.f32.mrf.mxu1 }
 0x122   :  { %v2125_v25 = vadd.f32 %v2124_v19, %v2105_v53  ;;  %3443 = vmatmul.f32.vlgmr.msrb.gmra.mxu2 %v4108_v18  ;;  %3403 = vmatmul.f32.vlgmr.msrb.gmra.mxu0 %v4110_v44  ;;  %v236_v18 = vld [vmem:[#allocation5 + $0x470] sm:$0xff] }
 0x123   :  { %3522 = vmatpush.xpose.msra.mxu2 %v232_v61  ;;  %3463 = vmatmul.f32.vlgmr.msrb.gmra.mxu3 %v4112_v46 }
 0x124   :  { %3423 = vmatmul.f32.vlgmr.msrb.gmra.mxu1 %v4114_v35  ;;  %v2145_v16 = vadd.f32 %v2144_v24, %v2125_v25  ;;  %3482 = vmatpush.xpose.msra.mxu0 %v230_v22 }
 0x125   :  { %3542 = vmatpush.xpose.msra.mxu3 %v233_v10  ;;  %v2164_v17 = vpop.f32.mrf.mxu2  ;;  %3502 = vmatpush.xpose.msra.mxu1 %v231_v54 }
 0x126   :  { %v2165_v20 = vadd.f32 %v2164_v17, %v2145_v16  ;;  %v2184_v28 = vpop.f32.mrf.mxu3 }
 0x127   :  { %3601 = vmatpush.xpose.msrb.mxu2 %v380_v13  ;;  %v2204_v44 = vpop.f32.mrf.mxu0 }
 0x128   :  { %3561 = vmatpush.xpose.msrb.mxu0 %v378_v11  ;;  %v2185_v46 = vadd.f32 %v2184_v28, %v2165_v20 }
 0x129   :  { %3621 = vmatpush.xpose.msrb.mxu3 %v381_v58  ;;  %3581 = vmatpush.xpose.msrb.mxu1 %v379_v14  ;;  %v2224_v35 = vpop.f32.mrf.mxu1 }
 0x12a   :  { %v2205_v31 = vadd.f32 %v2204_v44, %v2185_v46  ;;  %3523 = vmatmul.f32.vlgmr.msra.gmra.mxu2 %v597_v34  ;;  %3483 = vmatmul.f32.vlgmr.msra.gmra.mxu0 %v595_v47 }
 0x12b   :  { %3602 = vmatpush.xpose.msrb.mxu2 %v236_v18  ;;  %3543 = vmatmul.f32.vlgmr.msra.gmra.mxu3 %v598_v23 }
 0x12c   :  { %3503 = vmatmul.f32.vlgmr.msra.gmra.mxu1 %v596_v29  ;;  %v2225_v12 = vadd.f32 %v2224_v35, %v2205_v31  ;;  %3562 = vmatpush.xpose.msrb.mxu0 %v234_v48 }
 0x12d   :  { %3622 = vmatpush.xpose.msrb.mxu3 %v237_v9  ;;  %v2244_v37 = vpop.f32.mrf.mxu2  ;;  %3582 = vmatpush.xpose.msrb.mxu1 %v235_v38 }
 0x12e   :  { %v2245_v32 = vadd.f32 %v2244_v37, %v2225_v12  ;;  %v2264_v15 = vpop.f32.mrf.mxu3 }
 0x12f   :  { %v2284_v41 = vpop.f32.mrf.mxu0 }
 0x130   :  { %v2265_v43 = vadd.f32 %v2264_v15, %v2245_v32 }
 0x131   :  { %v2304_v45 = vpop.f32.mrf.mxu1 }
 0x132   :  { %v2285_v3 = vadd.f32 %v2284_v41, %v2265_v43  ;;  %3603 = vmatmul.f32.vlgmr.msrb.gmra.mxu2 %v601_v39  ;;  %3563 = vmatmul.f32.vlgmr.msrb.gmra.mxu0 %v599_v42 }
 0x133   :  { %3623 = vmatmul.f32.vlgmr.msrb.gmra.mxu3 %v602_v50 }
 0x134   :  { %3583 = vmatmul.f32.vlgmr.msrb.gmra.mxu1 %v600_v1  ;;  %v2305_v49 = vadd.f32 %v2304_v45, %v2285_v3 }
 0x135   :  { %v2324_v52 = vpop.f32.mrf.mxu2 }
 0x136   :  { %v2325_v4 = vadd.f32 %v2324_v52, %v2305_v49  ;;  %v2344_v36 = vpop.f32.mrf.mxu3 }
 0x137   :  { %v2364_v51 = vpop.f32.mrf.mxu0 }
 0x138   :  { %v2345_v6 = vadd.f32 %v2344_v36, %v2325_v4 }
 0x139   :  { %v2384_v30 = vpop.f32.mrf.mxu1 }
 0x13a   :  { %v2365_v56 = vadd.f32 %v2364_v51, %v2345_v6 }
 0x13c   :  { %v2385_v40 = vadd.f32 %v2384_v30, %v2365_v56 }
 0x13d   :  { %v2404_v62 = vpop.f32.mrf.mxu2 }
 0x13e   :  { %v2405_v55 = vadd.f32 %v2404_v62, %v2385_v40  ;;  %v2424_v0 = vpop.f32.mrf.mxu3 }
 0x13f   :  { %v2444_v2 = vpop.f32.mrf.mxu0 }
 0x140   :  { %v2425_v33 = vadd.f32 %v2424_v0, %v2405_v55 }
 0x141   :  { %v2464_v59 = vpop.f32.mrf.mxu1 }
 0x142   :  { %v2445_v57 = vadd.f32 %v2444_v2, %v2425_v33 }
 0x144   :  { %v2465_v60 = vadd.f32 %v2464_v59, %v2445_v57 }
 0x145   :  { %v2484_v63 = vpop.f32.mrf.mxu2 }
 0x146   :  { %v2485_v7 = vadd.f32 %v2484_v63, %v2465_v60  ;;  %v2504_v21 = vpop.f32.mrf.mxu3 }
 0x147   :  { %v2524_v26 = vpop.f32.mrf.mxu0 }
 0x148   :  { %v2505_v5 = vadd.f32 %v2504_v21, %v2485_v7 }
 0x149   :  { %v2544_v8 = vpop.f32.mrf.mxu1 }
 0x14a   :  { %v2525_v27 = vadd.f32 %v2524_v26, %v2505_v5 }
 0x14c   :  { %v2545_v61 = vadd.f32 %v2544_v8, %v2525_v27 }
 0x14d   :  { %v2564_v19 = vpop.f32.mrf.mxu2 }
 0x14e   :  { %v2565_v53 = vadd.f32 %v2564_v19, %v2545_v61  ;;  %v2584_v24 = vpop.f32.mrf.mxu3 }
 0x14f   :  { %v2604_v22 = vpop.f32.mrf.mxu0 }
 0x150   :  { %v2585_v10 = vadd.f32 %v2584_v24, %v2565_v53 }
 0x151   :  { %v2624_v25 = vpop.f32.mrf.mxu1 }
 0x152   :  { %v2605_v54 = vadd.f32 %v2604_v22, %v2585_v10 }
 0x154   :  { %v2625_v13 = vadd.f32 %v2624_v25, %v2605_v54 }
 0x155   :  { %v2644_v11 = vpop.f32.mrf.mxu2 }
 0x156   :  { %v2645_v58 = vadd.f32 %v2644_v11, %v2625_v13  ;;  %v2664_v16 = vpop.f32.mrf.mxu3 }
 0x157   :  { %v2684_v14 = vpop.f32.mrf.mxu0 }
 0x158   :  { %v2665_v17 = vadd.f32 %v2664_v16, %v2645_v58 }
 0x159   :  { %v2704_v20 = vpop.f32.mrf.mxu1 }
 0x15a   :  { %v2685_v28 = vadd.f32 %v2684_v14, %v2665_v17 }
 0x15c   :  { %v2705_v18 = vadd.f32 %v2704_v20, %v2685_v28 }
 0x15d   :  { %v2724_v44 = vpop.f32.mrf.mxu2 }
 0x15e   :  { %v2725_v34 = vadd.f32 %v2724_v44, %v2705_v18  ;;  %v2744_v47 = vpop.f32.mrf.mxu3 }
 0x15f   :  { %v2764_v46 = vpop.f32.mrf.mxu0 }
 0x160   :  { %v2745_v35 = vadd.f32 %v2744_v47, %v2725_v34 }
 0x161   :  { %v2784_v23 = vpop.f32.mrf.mxu1 }
 0x162   :  { %v2765_v29 = vadd.f32 %v2764_v46, %v2745_v35 }
 0x164   :  { %v2785_v48 = vadd.f32 %v2784_v23, %v2765_v29 }
 0x165   :  { %v2804_v9 = vpop.f32.mrf.mxu2 }
 0x166   :  { %v2805_v31 = vadd.f32 %v2804_v9, %v2785_v48  ;;  %v2824_v38 = vpop.f32.mrf.mxu3 }
 0x167   :  { %v2844_v12 = vpop.f32.mrf.mxu0 }
 0x168   :  { %v2825_v37 = vadd.f32 %v2824_v38, %v2805_v31 }
 0x169   :  { %v2864_v32 = vpop.f32.mrf.mxu1 }
 0x16a   :  { %v2845_v15 = vadd.f32 %v2844_v12, %v2825_v37 }
 0x16c   :  { %v2865_v41 = vadd.f32 %v2864_v32, %v2845_v15 }
 0x16d   :  { %v2884_v39 = vpop.f32.mrf.mxu2 }
 0x16e   :  { %v2885_v42 = vadd.f32 %v2884_v39, %v2865_v41  ;;  %v2904_v43 = vpop.f32.mrf.mxu3 }
 0x16f   :  { %v2924_v45 = vpop.f32.mrf.mxu0 }
 0x170   :  { %v2905_v50 = vadd.f32 %v2904_v43, %v2885_v42 }
 0x171   :  { %v2944_v1 = vpop.f32.mrf.mxu1 }
 0x172   :  { %v2925_v3 = vadd.f32 %v2924_v45, %v2905_v50 }
 0x174   :  { %v2945_v49 = vadd.f32 %v2944_v1, %v2925_v3 }
 0x175   :  { %v2964_v52 = vpop.f32.mrf.mxu2 }
 0x176   :  { %v2965_v4 = vadd.f32 %v2964_v52, %v2945_v49  ;;  %v2984_v36 = vpop.f32.mrf.mxu3 }
 0x177   :  { %v3004_v51 = vpop.f32.mrf.mxu0 }
 0x178   :  { %v2985_v6 = vadd.f32 %v2984_v36, %v2965_v4 }
 0x179   :  { %v3024_v30 = vpop.f32.mrf.mxu1 }
 0x17a   :  { %v3005_v56 = vadd.f32 %v3004_v51, %v2985_v6 }
 0x17c   :  { %v3025_v40 = vadd.f32 %v3024_v30, %v3005_v56 }
 0x17d   :  { %v3044_v62 = vpop.f32.mrf.mxu2 }
 0x17e   :  { %v3045_v55 = vadd.f32 %v3044_v62, %v3025_v40  ;;  %v3064_v0 = vpop.f32.mrf.mxu3 }
 0x17f   :  { %v3084_v2 = vpop.f32.mrf.mxu0 }
 0x180   :  { %v3065_v33 = vadd.f32 %v3064_v0, %v3045_v55 }
 0x181   :  { %v3104_v59 = vpop.f32.mrf.mxu1 }
 0x182   :  { %v3085_v57 = vadd.f32 %v3084_v2, %v3065_v33 }
 0x184   :  { %v3105_v60 = vadd.f32 %v3104_v59, %v3085_v57 }
 0x185   :  { %v3124_v63 = vpop.f32.mrf.mxu2 }
 0x186   :  { %v3125_v7 = vadd.f32 %v3124_v63, %v3105_v60  ;;  %v3144_v21 = vpop.f32.mrf.mxu3 }
 0x187   :  { %v3164_v26 = vpop.f32.mrf.mxu0 }
 0x188   :  { %v3145_v5 = vadd.f32 %v3144_v21, %v3125_v7 }
 0x189   :  { %v3184_v8 = vpop.f32.mrf.mxu1 }
 0x18a   :  { %v3165_v27 = vadd.f32 %v3164_v26, %v3145_v5 }
 0x18c   :  { %v3185_v61 = vadd.f32 %v3184_v8, %v3165_v27 }
 0x18d   :  { %v3204_v19 = vpop.f32.mrf.mxu2 }
 0x18e   :  { %v3205_v53 = vadd.f32 %v3204_v19, %v3185_v61  ;;  %v3224_v24 = vpop.f32.mrf.mxu3 }
 0x18f   :  { %v3244_v22 = vpop.f32.mrf.mxu0 }
 0x190   :  { %v3225_v10 = vadd.f32 %v3224_v24, %v3205_v53 }
 0x191   :  { %v3264_v25 = vpop.f32.mrf.mxu1 }
 0x192   :  { %v3245_v54 = vadd.f32 %v3244_v22, %v3225_v10 }
 0x194   :  { %v3265_v13 = vadd.f32 %v3264_v25, %v3245_v54 }
 0x195   :  { %v3284_v11 = vpop.f32.mrf.mxu2 }
 0x196   :  { %v3285_v58 = vadd.f32 %v3284_v11, %v3265_v13  ;;  %v3304_v16 = vpop.f32.mrf.mxu3 }
 0x197   :  { %v3324_v14 = vpop.f32.mrf.mxu0 }
 0x198   :  { %v3305_v17 = vadd.f32 %v3304_v16, %v3285_v58 }
 0x199   :  { %v3344_v20 = vpop.f32.mrf.mxu1 }
 0x19a   :  { %v3325_v28 = vadd.f32 %v3324_v14, %v3305_v17 }
 0x19c   :  { %v3345_v18 = vadd.f32 %v3344_v20, %v3325_v28 }
 0x19d   :  { %v3364_v44 = vpop.f32.mrf.mxu2 }
 0x19e   :  { %v3365_v34 = vadd.f32 %v3364_v44, %v3345_v18  ;;  %v3384_v47 = vpop.f32.mrf.mxu3 }
 0x19f   :  { %v3404_v46 = vpop.f32.mrf.mxu0 }
 0x1a0   :  { %v3385_v35 = vadd.f32 %v3384_v47, %v3365_v34 }
 0x1a1   :  { %v3424_v23 = vpop.f32.mrf.mxu1 }
 0x1a2   :  { %v3405_v29 = vadd.f32 %v3404_v46, %v3385_v35 }
 0x1a4   :  { %v3425_v48 = vadd.f32 %v3424_v23, %v3405_v29 }
 0x1a5   :  { %v3444_v9 = vpop.f32.mrf.mxu2 }
 0x1a6   :  { %v3445_v31 = vadd.f32 %v3444_v9, %v3425_v48  ;;  %v3464_v38 = vpop.f32.mrf.mxu3 }
 0x1a7   :  { %v3484_v12 = vpop.f32.mrf.mxu0 }
 0x1a8   :  { %v3465_v37 = vadd.f32 %v3464_v38, %v3445_v31 }
 0x1a9   :  { %v3504_v32 = vpop.f32.mrf.mxu1 }
 0x1aa   :  { %v3485_v15 = vadd.f32 %v3484_v12, %v3465_v37 }
 0x1ac   :  { %v3505_v41 = vadd.f32 %v3504_v32, %v3485_v15 }
 0x1ad   :  { %v3524_v39 = vpop.f32.mrf.mxu2 }
 0x1ae   :  { %v3525_v42 = vadd.f32 %v3524_v39, %v3505_v41  ;;  %v3544_v43 = vpop.f32.mrf.mxu3 }
 0x1af   :  { %v3564_v45 = vpop.f32.mrf.mxu0 }
 0x1b0   :  { %v3545_v50 = vadd.f32 %v3544_v43, %v3525_v42 }
 0x1b1   :  { %v3584_v1 = vpop.f32.mrf.mxu1 }
 0x1b2   :  { %v3565_v3 = vadd.f32 %v3564_v45, %v3545_v50 }
 0x1b4   :  { %v3585_v49 = vadd.f32 %v3584_v1, %v3565_v3 }
 0x1b5   :  { %v3604_v52 = vpop.f32.mrf.mxu2 }
 0x1b6   :  { %v3605_v4 = vadd.f32 %v3604_v52, %v3585_v49  ;;  %v3624_v36 = vpop.f32.mrf.mxu3 }
 0x1b8   :  { %v3625_v51 = vadd.f32 %v3624_v36, %v3605_v4 }
 0x1ba   :  { %v3628_v6 = vsel %vm3627_vm0, %v3625_v51, -inf }
 0x1bb   :  { %3629 = vmax.xlane.f32.xlu0 %v3628_v6 }
 0x22e   :  { %v3630_v30 = vpop.xlane.xlu0 %3629 }
 0x22f   :  { %v3631_v56 = vsub.f32 %v3625_v51, %v3630_v30 }
 0x231   :  { %v3632_v40 = vmul.f32 1.442695, %v3631_v56 }
 0x233   :  { %3667 = vpow2.f32 %v3632_v40 }
 0x239   :  { %v3668_v62 = vpop.eup %3667 }
 0x23a   :  { %v3634_v55 = vsel %vm3627_vm0, %v3668_v62, 0.0 }
 0x23b   :  { %3635 = vadd.xlane.f32.xlu0 %v3634_v55 }
 0x2ae   :  { %v3636_v0 = vpop.xlane.xlu0 %3635 }
 0x2af   :  { %3669 = vlog2.f32 %v3636_v0 }
 0x2b5   :  { %v3670_v2 = vpop.eup %3669 }
 0x2b6   :  { %v3638_v33 = vmul.f32 0.6931472, %v3670_v2 }
 0x2b8   :  { %v3639_v59 = vadd.f32 %v3638_v33, %v3630_v30 }
 0x2ba   :  { %v3640_v57 = vsub.f32 %v3625_v51, %v3639_v59 }
 0x2bc   :  { %3641 = vst.msk [vmem:[#allocation8] sm:$0x3] %vm3627_vm0, %v3640_v57 }
 0x2bd   :  { %3652 = dma.vmem_to_hbm [thread:$0]  %s3648_s2, 32, %s3650_s30, [#allocation4]  }
 0x2be   :  { %3771 = dma.done.wait [#allocation4], 32  }
 0x2bf   :  { %3772 = vsyncadd [#allocation4], 4294967264 }
 0x2c0   :  { %3657 = vsyncpa [#allocation3], 1 }
 0x2c1   :  { %3658 = vsyncpa [#allocation6], 1 }
 0x2c2   :  { %3659 = vsyncpa [#allocation4], 1 }

</bundles_post_ra>
